<compile_context>
chip_gen: v5e
topology: v5e:2x2
jax: 0.10.0
libtpu: 0.0.40
codegen_flags: <defaults>
</compile_context>

<pallas_src>
import functools

import numpy as np
import jax
import jax.numpy as jnp
from jax import lax
from jax.experimental import pallas as pl
from jax.experimental.pallas import tpu as pltpu

LN_EPS = 1e-5


def _round_up(v, m):
    return ((v + m - 1) // m) * m


def _gelu_tanh(x):
    # tanh-based GELU: runs on the EUP, freeing VALU slots. |err| vs exact GELU ~1e-3.
    c = 0.7978845608028654  # sqrt(2/pi)
    return 0.5 * x * (1.0 + jnp.tanh(c * (x + 0.044715 * x * x * x)))


# ----------------------------- fused Pallas kernel -----------------------------

def fused_layers_kernel(x_ref, cft_ref, cit_ref,
                        w1_ref, b1_ref, w2_ref, b2_ref,
                        g_ref, be_ref, wf1_ref, bf1_ref, wf2_ref, bf2_ref,
                        o_ref, *, tb, n_pad, k_pad, c):
    """Grid = (batch_tiles, depth).  o_ref is the resident residual-stream accumulator."""
    l = pl.program_id(1)

    @pl.when(l == 0)
    def _():
        o_ref[...] = x_ref[...]

    x = o_ref[...]                                     # [TB*N_pad, C] f32 residual stream

    # ---- GCO: forward cosine DFT as ONE big matmul over the node axis ----
    # Minor-dim swaps are XLU work; every reshape below splits/merges leading dims only
    # (second-minor dims are multiples of 8), so they are layout-preserving.
    xt = jnp.transpose(x.reshape(tb, n_pad, c), (0, 2, 1)).reshape(tb * c, n_pad)
    srt = jnp.dot(xt.astype(jnp.bfloat16), cft_ref[...],
                  preferred_element_type=jnp.float32)             # [TB*C, K_pad]
    sr = jnp.transpose(srt.reshape(tb, c, k_pad), (0, 2, 1)).reshape(tb * k_pad, c)

    # block-diagonal spectral MLP as two [TB*K_pad, C]-row matmuls
    h = jnp.dot(sr.astype(jnp.bfloat16), w1_ref[l],
                preferred_element_type=jnp.float32) + b1_ref[l]
    h = jnp.maximum(h, 0.0)                                       # ReLU
    y = jnp.dot(h.astype(jnp.bfloat16), w2_ref[l],
                preferred_element_type=jnp.float32) + b2_ref[l]   # [TB*K_pad, C]

    # inverse cosine DFT (kept modes only), again one big matmul
    yt = jnp.transpose(y.reshape(tb, k_pad, c), (0, 2, 1)).reshape(tb * c, k_pad)
    gcot = jnp.dot(yt.astype(jnp.bfloat16), cit_ref[...],
                   preferred_element_type=jnp.float32)            # [TB*C, N_pad]
    gco = jnp.transpose(gcot.reshape(tb, c, n_pad), (0, 2, 1)).reshape(tb * n_pad, c)

    # GCO returns irfft + x (its internal bias); the outer loop adds x again -> +2x.
    x1 = gco + 2.0 * x

    # ---- PreNorm (LayerNorm) + FeedForward + residual ----
    mu = jnp.mean(x1, axis=-1, keepdims=True)
    var = jnp.mean(jnp.square(x1 - mu), axis=-1, keepdims=True)
    xn = (x1 - mu) * lax.rsqrt(var + LN_EPS) * g_ref[l] + be_ref[l]
    h2 = jnp.dot(xn.astype(jnp.bfloat16), wf1_ref[l],
                 preferred_element_type=jnp.float32) + bf1_ref[l]
    h2 = _gelu_tanh(h2)
    ff = jnp.dot(h2.astype(jnp.bfloat16), wf2_ref[l],
                 preferred_element_type=jnp.float32) + bf2_ref[l]

    o_ref[...] = ff + x1       # carried to the next layer; HBM writeback once per tile


# ----------------------------- host-side DFT matrices -----------------------------

def build_dft_mats(N, kept, n_pad, k_pad):
    """CfT[n,k] = cos(2πkn/N)/sqrt(N); CiT[k,n] = w_k cos(2πkn/N)/sqrt(N)
    (Hermitian weights w_0 = 1, w_k = 2, w_{N/2} = 1 for even N).  Only the kept modes
    are materialized; padded rows/cols are zero so padded nodes never contaminate."""
    K = N // 2 + 1
    keep = min(max(kept, 0), K)
    kk = np.arange(K)
    nn_ = np.arange(N)
    ang = 2.0 * np.pi * np.outer(nn_, kk) / N           # [N, K]
    cos = np.cos(ang) / np.sqrt(N)
    w = np.full(K, 2.0)
    w[0] = 1.0
    if N % 2 == 0:
        w[-1] = 1.0
    cft = np.zeros((n_pad, k_pad), np.float32)
    cft[:N, :keep] = cos[:, :keep]
    cit = np.zeros((k_pad, n_pad), np.float32)
    cit[:keep, :N] = (cos * w).T[:keep, :]
    return jnp.asarray(cft, jnp.bfloat16), jnp.asarray(cit, jnp.bfloat16)


# ----------------------------- tiling / VMEM budgeting -----------------------------

def _vmem_capacity_bytes():
    try:
        info = pltpu.get_tpu_info()
        for attr in ("vmem_capacity_bytes", "vmem_size_bytes", "vmem_bytes"):
            v = getattr(info, attr, None)
            if v:
                return int(v)
    except Exception:
        pass
    return 64 * 1024 * 1024     # conservative fallback: v7x per-TensorCore VMEM


def _pick_tile_and_vmem(BT, n_pad, c, cfd, mlp, k_pad, block_bt):
    """Pick TB (batch*time elements per tile) from the per-generation VMEM budget."""
    lane = 128
    cap = _vmem_capacity_bytes()
    vmem_limit = min(cap * 3 // 4, 100 * 1024 * 1024)
    c_l = _round_up(c, lane)
    n_l = _round_up(n_pad, lane)
    k_l = _round_up(k_pad, lane)
    m_l = _round_up(mlp, lane)
    f_l = _round_up(cfd, lane)
    # f32 bytes of lane-padded VMEM per batch element: pipeline blocks (in + out, each
    # double-buffered) plus the major live temporaries inside one layer step.
    per_bt = 4 * (4 * n_pad * c_l                  # x_ref + o_ref blocks (2 buffers each)
                  + 4 * n_pad * c_l                # x1 / xn / gco / out f32 temps
                  + 2 * c * n_l + 2 * c * k_l      # channel-major transposed temps
                  + k_pad * (c_l + f_l)            # spectral block-MLP temps
                  + n_pad * m_l)                   # FF hidden
    budget = max(vmem_limit - (8 << 20), 4 << 20)  # headroom: weights, DFT mats, misc
    tb = max(1, budget // per_bt)
    if block_bt is not None:
        tb = min(tb, int(block_bt))
    if BT >= 2:                    # guarantee >= 2 batch tiles (v7x megacore split)
        tb = min(tb, (BT + 1) // 2)
    tb = max(1, min(tb, max(BT, 1)))
    return int(tb), int(vmem_limit)


# ----------------------------- Pallas wrapper -----------------------------

def run_layers(xs, layers, GCO_Thre, *, block_bt=None):
    """xs: [BT, N, C] float32.  Runs all `depth` layers in one fused pallas_call."""
    BT, N, C = xs.shape
    depth = len(layers)
    K = N // 2 + 1
    kept = int(K * GCO_Thre)
    N_pad = _round_up(N, 8)
    K_pad = max(8, _round_up(max(kept, 1), 8))

    CfT, CiT = build_dft_mats(N, kept, N_pad, K_pad)

    def stack(name, dt=None):
        a = jnp.stack([lp[name] for lp in layers], axis=0)
        return a.astype(dt) if dt is not None else a

    w1 = stack("w1bd", jnp.bfloat16)
    b1 = stack("b1f")
    w2 = stack("w2bd", jnp.bfloat16)
    b2 = stack("b2f")
    g = stack("gamma")
    be = stack("beta")
    wf1 = stack("wf1", jnp.bfloat16)
    bf1 = stack("bf1")
    wf2 = stack("wf2", jnp.bfloat16)
    bf2 = stack("bf2")
    Cfd = w1.shape[2]
    mlp = wf1.shape[2]

    TB, vmem_limit = _pick_tile_and_vmem(BT, N_pad, C, Cfd, mlp, K_pad, block_bt)
    BT_pad = _round_up(BT, TB)

    xp = jnp.pad(xs, ((0, BT_pad - BT), (0, N_pad - N), (0, 0)))
    x2d = xp.reshape(BT_pad * N_pad, C).astype(jnp.float32)

    rows = TB * N_pad
    grid = (BT_pad // TB, depth)

    act_map = lambda i, l: (i, 0)      # activations: re-DMA only when the tile changes
    cst_map = lambda i, l: (0, 0)      # DFT matrices: fetched once
    w_map = lambda i, l: (0, 0, 0)     # full-depth weight stacks: fetched once

    kernel = functools.partial(fused_layers_kernel,
                               tb=TB, n_pad=N_pad, k_pad=K_pad, c=C)

    out2d = pl.pallas_call(
        kernel,
        out_shape=jax.ShapeDtypeStruct((BT_pad * N_pad, C), jnp.float32),
        grid_spec=pltpu.PrefetchScalarGridSpec(
            num_scalar_prefetch=0,
            grid=grid,
            in_specs=[
                pl.BlockSpec((rows, C), act_map),          # activations
                pl.BlockSpec((N_pad, K_pad), cst_map),     # forward cosine DFT (transposed)
                pl.BlockSpec((K_pad, N_pad), cst_map),     # inverse cosine DFT (transposed)
                pl.BlockSpec((depth, C, Cfd), w_map),      # GCO w1 (block-diag), all layers
                pl.BlockSpec((depth, 1, Cfd), w_map),      # GCO b1
                pl.BlockSpec((depth, Cfd, C), w_map),      # GCO w2 (block-diag)
                pl.BlockSpec((depth, 1, C), w_map),        # GCO b2
                pl.BlockSpec((depth, 1, C), w_map),        # LN gamma
                pl.BlockSpec((depth, 1, C), w_map),        # LN beta
                pl.BlockSpec((depth, C, mlp), w_map),      # FF linear 1 weight
                pl.BlockSpec((depth, 1, mlp), w_map),      # FF linear 1 bias
                pl.BlockSpec((depth, mlp, C), w_map),      # FF linear 2 weight
                pl.BlockSpec((depth, 1, C), w_map),        # FF linear 2 bias
            ],
            out_specs=pl.BlockSpec((rows, C), act_map),
        ),
        compiler_params=pltpu.CompilerParams(
            dimension_semantics=("parallel", "arbitrary"),
            vmem_limit_bytes=vmem_limit),
    )(x2d, CfT, CiT, w1, b1, w2, b2, g, be, wf1, bf1, wf2, bf2)

    return out2d.reshape(BT_pad, N_pad, C)[:BT, :N, :]


def spatial_transformer_pallas(x, covars, semantic, params, GCO_Thre=1.0,
                               spatial_encoding=True, temporal_encoding=True,
                               block_bt=None):
    b, c, n, t = x.shape
    xs = jnp.transpose(x, (0, 3, 2, 1)).reshape(b * t, n, c)
    cov = jnp.transpose(covars, (0, 3, 2, 1)).reshape(b * t, 1, c)
    if spatial_encoding:
        # one-shot 16-row MLP: cheaper in plain XLA than a pallas_call launch
        sp = params["sem"]
        h = jax.nn.relu(semantic @ sp["w1"] + sp["b1"])
        h = jax.nn.relu(h @ sp["w2"] + sp["b2"])
        sem_emb = h @ sp["w3"] + sp["b3"]
        xs = xs + jnp.concatenate([params["pos_embedding"], sem_emb], axis=-1)[None]
    if temporal_encoding:
        xs = jnp.concatenate([cov, xs], axis=1)
    N = xs.shape[1]
    xs = run_layers(xs, params["layers"], GCO_Thre, block_bt=block_bt)
    out = jnp.transpose(xs.reshape(b, t, N, c), (0, 3, 2, 1))
    if temporal_encoding:
        return out[:, :, 1:, :], out[:, :, :1, :]
    return out, covars


# ----------------------------- parameter init -----------------------------

def init_params(key, dim, mlp_dim, depth, num_nodes, semantic_dim, num_blocks=8, hsf=1):
    bs = dim // num_blocks
    scale = 0.02
    keys = iter(jax.random.split(key, 16 + depth * 8))
    nrm = lambda k, shp, s=1.0: (s * jax.random.normal(k, shp)).astype(jnp.float32)

    params = {"pos_embedding": nrm(next(keys), (num_nodes, dim // 8))}
    emb_out = dim - dim // 8
    params["sem"] = {
        "w1": nrm(next(keys), (semantic_dim, 32), 0.1), "b1": nrm(next(keys), (1, 32), 0.1),
        "w2": nrm(next(keys), (32, 128), 0.1),          "b2": nrm(next(keys), (1, 128), 0.1),
        "w3": nrm(next(keys), (128, emb_out), 0.1),     "b3": nrm(next(keys), (1, emb_out), 0.1),
    }
    layers = []
    for _ in range(depth):
        w1 = nrm(next(keys), (num_blocks, bs, bs * hsf), scale)
        b1 = nrm(next(keys), (num_blocks, bs * hsf), scale)
        w2 = nrm(next(keys), (num_blocks, bs * hsf, bs), scale)
        b2 = nrm(next(keys), (num_blocks, bs), scale)
        lp = {
            "w1": w1, "b1": b1, "w2": w2, "b2": b2,
            # block-diagonal equivalents of the per-block einsum, used inside the kernel
            "w1bd": jax.scipy.linalg.block_diag(*[w1[i] for i in range(num_blocks)]),
            "b1f": b1.reshape(1, -1),
            "w2bd": jax.scipy.linalg.block_diag(*[w2[i] for i in range(num_blocks)]),
            "b2f": b2.reshape(1, -1),
            "gamma": jnp.ones((1, dim), jnp.float32), "beta": jnp.zeros((1, dim), jnp.float32),
            "wf1": nrm(next(keys), (dim, mlp_dim), 0.05), "bf1": nrm(next(keys), (1, mlp_dim), 0.05),
            "wf2": nrm(next(keys), (mlp_dim, dim), 0.05), "bf2": nrm(next(keys), (1, dim), 0.05),
        }
        layers.append(lp)
    params["layers"] = layers
    return params


# ----------------------------- pure-JAX reference (verification) -----------------------------

def ref_forward(x, covars, semantic, params, GCO_Thre, num_blocks,
                spatial_encoding=True, temporal_encoding=True):
    b, c, n, t = x.shape
    xs = jnp.transpose(x, (0, 3, 2, 1)).reshape(b * t, n, c)
    cov = jnp.transpose(covars, (0, 3, 2, 1)).reshape(b * t, 1, c)
    if spatial_encoding:
        sp = params["sem"]
        h = jax.nn.relu(semantic @ sp["w1"] + sp["b1"])
        h = jax.nn.relu(h @ sp["w2"] + sp["b2"])
        sem_emb = h @ sp["w3"] + sp["b3"]
        xs = xs + jnp.concatenate([params["pos_embedding"], sem_emb], -1)[None]
    if temporal_encoding:
        xs = jnp.concatenate([cov, xs], 1)
    N = xs.shape[1]
    K = N // 2 + 1
    kept = int(K * GCO_Thre)
    bs = c // num_blocks
    for lp in params["layers"]:
        # --- GCO via real fft (ground truth) ---
        X = jnp.fft.rfft(xs, axis=1, norm='ortho')
        Xb = X.reshape(xs.shape[0], K, num_blocks, bs)
        hid = lp["w1"].shape[-1]
        r1 = jnp.zeros((xs.shape[0], K, num_blocks, hid))
        r1 = r1.at[:, :kept].set(jax.nn.relu(
            jnp.einsum('...bi,bio->...bo', Xb[:, :kept].real, lp["w1"]) + lp["b1"]))
        r2 = jnp.zeros((xs.shape[0], K, num_blocks, bs))
        r2 = r2.at[:, :kept].set(
            jnp.einsum('...bi,bio->...bo', r1[:, :kept], lp["w2"]) + lp["b2"])
        spec = r2.reshape(xs.shape[0], K, c).astype(jnp.complex64)
        gco = jnp.fft.irfft(spec, n=N, axis=1, norm='ortho')
        xs = (gco + xs) + xs
        # --- PreNorm + FF ---
        mu = jnp.mean(xs, -1, keepdims=True)
        var = jnp.mean((xs - mu) ** 2, -1, keepdims=True)
        xn = (xs - mu) / jnp.sqrt(var + LN_EPS) * lp["gamma"] + lp["beta"]
        h = jax.nn.gelu(xn @ lp["wf1"] + lp["bf1"], approximate=False)
        xs = (h @ lp["wf2"] + lp["bf2"]) + xs
    out = jnp.transpose(xs.reshape(b, t, N, c), (0, 3, 2, 1))
    if temporal_encoding:
        return out[:, :, 1:, :], out[:, :, :1, :]
    return out, covars


# ----------------------------- main -----------------------------

if __name__ == "__main__":
    # small shapes consistent with the module: x [b, c, n, t]
    b, c, n, t = 2, 32, 16, 4
    depth = 2
    mlp_dim = 64
    num_blocks = 8
    semantic_dim = 9
    GCO_Thre = 1.0
    spatial_encoding = True
    temporal_encoding = True

    key = jax.random.PRNGKey(0)
    kx, kc, ks, kp = jax.random.split(key, 4)
    x = jax.random.normal(kx, (b, c, n, t), jnp.float32)
    covars = jax.random.normal(kc, (b, c, 1, t), jnp.float32)
    semantic = jax.random.normal(ks, (n, semantic_dim), jnp.float32)

    params = init_params(kp, c, mlp_dim, depth, n, semantic_dim, num_blocks, hsf=1)

    out, cov_out = spatial_transformer_pallas(
        x, covars, semantic, params, GCO_Thre=GCO_Thre,
        spatial_encoding=spatial_encoding, temporal_encoding=temporal_encoding)
    out = jax.block_until_ready(out)
    cov_out = jax.block_until_ready(cov_out)

    ref_out, ref_cov = ref_forward(x, covars, semantic, params, GCO_Thre, num_blocks,
                                   spatial_encoding, temporal_encoding)

    # bf16 matmul operands + tanh-GELU vs exact erf GELU: ~2-3e-3 absolute over 2 layers
    np.testing.assert_allclose(np.asarray(out), np.asarray(ref_out), rtol=1e-2, atol=1e-2)
    np.testing.assert_allclose(np.asarray(cov_out), np.asarray(ref_cov), rtol=1e-2, atol=1e-2)
    print("KERNEL_OK")
</pallas_src>

<mosaic_0001>
module attributes {stable_mosaic.version = 11 : i64} {
  func.func @fused_layers_kernel(%arg0: i32, %arg1: i32, %arg2: memref<96x32xf32, #tpu.memory_space<vmem>>, %arg3: memref<24x16xbf16, #tpu.memory_space<vmem>>, %arg4: memref<16x24xbf16, #tpu.memory_space<vmem>>, %arg5: memref<2x32x32xbf16, #tpu.memory_space<vmem>>, %arg6: memref<2x1x32xf32, #tpu.memory_space<vmem>>, %arg7: memref<2x32x32xbf16, #tpu.memory_space<vmem>>, %arg8: memref<2x1x32xf32, #tpu.memory_space<vmem>>, %arg9: memref<2x1x32xf32, #tpu.memory_space<vmem>>, %arg10: memref<2x1x32xf32, #tpu.memory_space<vmem>>, %arg11: memref<2x32x64xbf16, #tpu.memory_space<vmem>>, %arg12: memref<2x1x64xf32, #tpu.memory_space<vmem>>, %arg13: memref<2x64x32xbf16, #tpu.memory_space<vmem>>, %arg14: memref<2x1x32xf32, #tpu.memory_space<vmem>>, %arg15: memref<96x32xf32, #tpu.memory_space<vmem>>) attributes {dimension_semantics = [#tpu.dimension_semantics<parallel>, #tpu.dimension_semantics<arbitrary>], iteration_bounds = array<i64: 2, 2>, scalar_prefetch = 0 : i64, scratch_operands = 0 : i64, tpu.core_type = #tpu.core_type<tc>, window_params = [{transform_indices = @transform_0, window_bounds = array<i64: 96, 32>}, {pipeline_mode = #tpu.pipeline_mode<synchronous>, transform_indices = @transform_1, window_bounds = array<i64: 24, 16>}, {pipeline_mode = #tpu.pipeline_mode<synchronous>, transform_indices = @transform_2, window_bounds = array<i64: 16, 24>}, {pipeline_mode = #tpu.pipeline_mode<synchronous>, transform_indices = @transform_3, window_bounds = array<i64: 2, 32, 32>}, {pipeline_mode = #tpu.pipeline_mode<synchronous>, transform_indices = @transform_4, window_bounds = array<i64: 2, 1, 32>}, {pipeline_mode = #tpu.pipeline_mode<synchronous>, transform_indices = @transform_5, window_bounds = array<i64: 2, 32, 32>}, {pipeline_mode = #tpu.pipeline_mode<synchronous>, transform_indices = @transform_6, window_bounds = array<i64: 2, 1, 32>}, {pipeline_mode = #tpu.pipeline_mode<synchronous>, transform_indices = @transform_7, window_bounds = array<i64: 2, 1, 32>}, {pipeline_mode = #tpu.pipeline_mode<synchronous>, transform_indices = @transform_8, window_bounds = array<i64: 2, 1, 32>}, {pipeline_mode = #tpu.pipeline_mode<synchronous>, transform_indices = @transform_9, window_bounds = array<i64: 2, 32, 64>}, {pipeline_mode = #tpu.pipeline_mode<synchronous>, transform_indices = @transform_10, window_bounds = array<i64: 2, 1, 64>}, {pipeline_mode = #tpu.pipeline_mode<synchronous>, transform_indices = @transform_11, window_bounds = array<i64: 2, 64, 32>}, {pipeline_mode = #tpu.pipeline_mode<synchronous>, transform_indices = @transform_12, window_bounds = array<i64: 2, 1, 32>}, {transform_indices = @transform_13, window_bounds = array<i64: 96, 32>}]} {
    %c0_i32 = arith.constant 0 : i32
    %0 = arith.cmpi eq, %arg1, %c0_i32 : i32
    %1 = arith.extui %0 : i1 to i32
    %c0_i32_0 = arith.constant 0 : i32
    %2 = arith.cmpi ne, %1, %c0_i32_0 : i32
    scf.if %2 {
      %c0_44 = arith.constant 0 : index
      %c0_45 = arith.constant 0 : index
      %110 = vector.load %arg2[%c0_44, %c0_45] : memref<96x32xf32, #tpu.memory_space<vmem>>, vector<96x32xf32>
      %c0_46 = arith.constant 0 : index
      %c0_47 = arith.constant 0 : index
      %111 = vector.load %arg15[%c0_46, %c0_47] : memref<96x32xf32, #tpu.memory_space<vmem>>, vector<96x32xf32>
      tpu.vector_store %arg15[%c0_46, %c0_47], %110 {strides = array<i32>} : memref<96x32xf32, #tpu.memory_space<vmem>>, vector<96x32xf32>,
    } else {
    }
    %c0 = arith.constant 0 : index
    %c0_1 = arith.constant 0 : index
    %3 = vector.load %arg15[%c0, %c0_1] : memref<96x32xf32, #tpu.memory_space<vmem>>, vector<96x32xf32>
    %4 = vector.shape_cast %3 : vector<96x32xf32> to vector<4x24x32xf32>
    %5 = tpu.transpose %4, [0, 2, 1] : vector<4x24x32xf32> -> vector<4x32x24xf32>
    %6 = vector.shape_cast %5 : vector<4x32x24xf32> to vector<128x24xf32>
    %7 = arith.truncf %6 : vector<128x24xf32> to vector<128x24xbf16>
    %c0_2 = arith.constant 0 : index
    %c0_3 = arith.constant 0 : index
    %8 = vector.load %arg3[%c0_2, %c0_3] : memref<24x16xbf16, #tpu.memory_space<vmem>>, vector<24x16xbf16>
    %cst = arith.constant dense<0.000000e+00> : vector<128x16xf32>
    %9 = tpu.matmul %7, %8, %cst {dimension_numbers = #tpu.dot_dimension_numbers<[1], [0], [0], [1], [0, 0, 1, 1], [], []>} : vector<128x24xbf16>, vector<24x16xbf16>, vector<128x16xf32> -> vector<128x16xf32>
    %10 = vector.shape_cast %9 : vector<128x16xf32> to vector<4x32x16xf32>
    %11 = tpu.transpose %10, [0, 2, 1] : vector<4x32x16xf32> -> vector<4x16x32xf32>
    %12 = vector.shape_cast %11 : vector<4x16x32xf32> to vector<64x32xf32>
    %13 = arith.truncf %12 : vector<64x32xf32> to vector<64x32xbf16>
    %14 = arith.index_cast %arg1 : i32 to index
    %c0_4 = arith.constant 0 : index
    %c0_5 = arith.constant 0 : index
    %15 = vector.load %arg5[%14, %c0_4, %c0_5] : memref<2x32x32xbf16, #tpu.memory_space<vmem>>, vector<1x32x32xbf16>
    %16 = vector.shape_cast %15 : vector<1x32x32xbf16> to vector<32x32xbf16>
    %cst_6 = arith.constant dense<0.000000e+00> : vector<64x32xf32>
    %17 = tpu.matmul %13, %16, %cst_6 {dimension_numbers = #tpu.dot_dimension_numbers<[1], [0], [0], [1], [0, 0, 1, 1], [], []>} : vector<64x32xbf16>, vector<32x32xbf16>, vector<64x32xf32> -> vector<64x32xf32>
    %18 = arith.index_cast %arg1 : i32 to index
    %c0_7 = arith.constant 0 : index
    %c0_8 = arith.constant 0 : index
    %19 = vector.load %arg6[%18, %c0_7, %c0_8] : memref<2x1x32xf32, #tpu.memory_space<vmem>>, vector<1x1x32xf32>
    %20 = vector.shape_cast %19 : vector<1x1x32xf32> to vector<1x32xf32>
    %21 = vector.broadcast %20 : vector<1x32xf32> to vector<64x32xf32>
    %22 = arith.addf %17, %21 : vector<64x32xf32>
    %cst_9 = arith.constant 0.000000e+00 : f32
    %23 = vector.broadcast %cst_9 : f32 to vector<64x32xf32>
    %24 = arith.maximumf %22, %23 : vector<64x32xf32>
    %25 = arith.truncf %24 : vector<64x32xf32> to vector<64x32xbf16>
    %26 = arith.index_cast %arg1 : i32 to index
    %c0_10 = arith.constant 0 : index
    %c0_11 = arith.constant 0 : index
    %27 = vector.load %arg7[%26, %c0_10, %c0_11] : memref<2x32x32xbf16, #tpu.memory_space<vmem>>, vector<1x32x32xbf16>
    %28 = vector.shape_cast %27 : vector<1x32x32xbf16> to vector<32x32xbf16>
    %cst_12 = arith.constant dense<0.000000e+00> : vector<64x32xf32>
    %29 = tpu.matmul %25, %28, %cst_12 {dimension_numbers = #tpu.dot_dimension_numbers<[1], [0], [0], [1], [0, 0, 1, 1], [], []>} : vector<64x32xbf16>, vector<32x32xbf16>, vector<64x32xf32> -> vector<64x32xf32>
    %30 = arith.index_cast %arg1 : i32 to index
    %c0_13 = arith.constant 0 : index
    %c0_14 = arith.constant 0 : index
    %31 = vector.load %arg8[%30, %c0_13, %c0_14] : memref<2x1x32xf32, #tpu.memory_space<vmem>>, vector<1x1x32xf32>
    %32 = vector.shape_cast %31 : vector<1x1x32xf32> to vector<1x32xf32>
    %33 = vector.broadcast %32 : vector<1x32xf32> to vector<64x32xf32>
    %34 = arith.addf %29, %33 : vector<64x32xf32>
    %35 = vector.shape_cast %34 : vector<64x32xf32> to vector<4x16x32xf32>
    %36 = tpu.transpose %35, [0, 2, 1] : vector<4x16x32xf32> -> vector<4x32x16xf32>
    %37 = vector.shape_cast %36 : vector<4x32x16xf32> to vector<128x16xf32>
    %38 = arith.truncf %37 : vector<128x16xf32> to vector<128x16xbf16>
    %c0_15 = arith.constant 0 : index
    %c0_16 = arith.constant 0 : index
    %39 = vector.load %arg4[%c0_15, %c0_16] : memref<16x24xbf16, #tpu.memory_space<vmem>>, vector<16x24xbf16>
    %cst_17 = arith.constant dense<0.000000e+00> : vector<128x24xf32>
    %40 = tpu.matmul %38, %39, %cst_17 {dimension_numbers = #tpu.dot_dimension_numbers<[1], [0], [0], [1], [0, 0, 1, 1], [], []>} : vector<128x16xbf16>, vector<16x24xbf16>, vector<128x24xf32> -> vector<128x24xf32>
    %41 = vector.shape_cast %40 : vector<128x24xf32> to vector<4x32x24xf32>
    %42 = tpu.transpose %41, [0, 2, 1] : vector<4x32x24xf32> -> vector<4x24x32xf32>
    %43 = vector.shape_cast %42 : vector<4x24x32xf32> to vector<96x32xf32>
    %cst_18 = arith.constant 2.000000e+00 : f32
    %44 = vector.broadcast %cst_18 : f32 to vector<96x32xf32>
    %45 = arith.mulf %44, %3 : vector<96x32xf32>
    %46 = arith.addf %43, %45 : vector<96x32xf32>
    %cst_19 = arith.constant dense<0.000000e+00> : vector<96xf32>
    %47 = vector.multi_reduction <add>, %46, %cst_19 [1] : vector<96x32xf32> to vector<96xf32>
    %48 = vector.shape_cast %47 : vector<96xf32> to vector<96x1xf32>
    %cst_20 = arith.constant 3.200000e+01 : f32
    %49 = vector.broadcast %cst_20 : f32 to vector<96x1xf32>
    %50 = arith.divf %48, %49 : vector<96x1xf32>
    %51 = vector.broadcast %50 : vector<96x1xf32> to vector<96x32xf32>
    %52 = arith.subf %46, %51 : vector<96x32xf32>
    %53 = arith.mulf %52, %52 : vector<96x32xf32>
    %cst_21 = arith.constant dense<0.000000e+00> : vector<96xf32>
    %54 = vector.multi_reduction <add>, %53, %cst_21 [1] : vector<96x32xf32> to vector<96xf32>
    %55 = vector.shape_cast %54 : vector<96xf32> to vector<96x1xf32>
    %cst_22 = arith.constant 3.200000e+01 : f32
    %56 = vector.broadcast %cst_22 : f32 to vector<96x1xf32>
    %57 = arith.divf %55, %56 : vector<96x1xf32>
    %58 = vector.broadcast %50 : vector<96x1xf32> to vector<96x32xf32>
    %59 = arith.subf %46, %58 : vector<96x32xf32>
    %cst_23 = arith.constant 9.99999974E-6 : f32
    %60 = vector.broadcast %cst_23 : f32 to vector<96x1xf32>
    %61 = arith.addf %57, %60 : vector<96x1xf32>
    %62 = math.rsqrt %61 : vector<96x1xf32>
    %63 = vector.broadcast %62 : vector<96x1xf32> to vector<96x32xf32>
    %64 = arith.mulf %59, %63 : vector<96x32xf32>
    %65 = arith.index_cast %arg1 : i32 to index
    %c0_24 = arith.constant 0 : index
    %c0_25 = arith.constant 0 : index
    %66 = vector.load %arg9[%65, %c0_24, %c0_25] : memref<2x1x32xf32, #tpu.memory_space<vmem>>, vector<1x1x32xf32>
    %67 = vector.shape_cast %66 : vector<1x1x32xf32> to vector<1x32xf32>
    %68 = vector.broadcast %67 : vector<1x32xf32> to vector<96x32xf32>
    %69 = arith.mulf %64, %68 : vector<96x32xf32>
    %70 = arith.index_cast %arg1 : i32 to index
    %c0_26 = arith.constant 0 : index
    %c0_27 = arith.constant 0 : index
    %71 = vector.load %arg10[%70, %c0_26, %c0_27] : memref<2x1x32xf32, #tpu.memory_space<vmem>>, vector<1x1x32xf32>
    %72 = vector.shape_cast %71 : vector<1x1x32xf32> to vector<1x32xf32>
    %73 = vector.broadcast %72 : vector<1x32xf32> to vector<96x32xf32>
    %74 = arith.addf %69, %73 : vector<96x32xf32>
    %75 = arith.truncf %74 : vector<96x32xf32> to vector<96x32xbf16>
    %76 = arith.index_cast %arg1 : i32 to index
    %c0_28 = arith.constant 0 : index
    %c0_29 = arith.constant 0 : index
    %77 = vector.load %arg11[%76, %c0_28, %c0_29] : memref<2x32x64xbf16, #tpu.memory_space<vmem>>, vector<1x32x64xbf16>
    %78 = vector.shape_cast %77 : vector<1x32x64xbf16> to vector<32x64xbf16>
    %cst_30 = arith.constant dense<0.000000e+00> : vector<96x64xf32>
    %79 = tpu.matmul %75, %78, %cst_30 {dimension_numbers = #tpu.dot_dimension_numbers<[1], [0], [0], [1], [0, 0, 1, 1], [], []>} : vector<96x32xbf16>, vector<32x64xbf16>, vector<96x64xf32> -> vector<96x64xf32>
    %80 = arith.index_cast %arg1 : i32 to index
    %c0_31 = arith.constant 0 : index
    %c0_32 = arith.constant 0 : index
    %81 = vector.load %arg12[%80, %c0_31, %c0_32] : memref<2x1x64xf32, #tpu.memory_space<vmem>>, vector<1x1x64xf32>
    %82 = vector.shape_cast %81 : vector<1x1x64xf32> to vector<1x64xf32>
    %83 = vector.broadcast %82 : vector<1x64xf32> to vector<96x64xf32>
    %84 = arith.addf %79, %83 : vector<96x64xf32>
    %cst_33 = arith.constant 5.000000e-01 : f32
    %85 = vector.broadcast %cst_33 : f32 to vector<96x64xf32>
    %86 = arith.mulf %85, %84 : vector<96x64xf32>
    %cst_34 = arith.constant 4.471500e-02 : f32
    %87 = vector.broadcast %cst_34 : f32 to vector<96x64xf32>
    %88 = arith.mulf %87, %84 : vector<96x64xf32>
    %89 = arith.mulf %88, %84 : vector<96x64xf32>
    %90 = arith.mulf %89, %84 : vector<96x64xf32>
    %91 = arith.addf %84, %90 : vector<96x64xf32>
    %cst_35 = arith.constant 0.797884583 : f32
    %92 = vector.broadcast %cst_35 : f32 to vector<96x64xf32>
    %93 = arith.mulf %92, %91 : vector<96x64xf32>
    %94 = math.tanh %93 : vector<96x64xf32>
    %cst_36 = arith.constant 1.000000e+00 : f32
    %95 = vector.broadcast %cst_36 : f32 to vector<96x64xf32>
    %96 = arith.addf %95, %94 : vector<96x64xf32>
    %97 = arith.mulf %86, %96 : vector<96x64xf32>
    %98 = arith.truncf %97 : vector<96x64xf32> to vector<96x64xbf16>
    %99 = arith.index_cast %arg1 : i32 to index
    %c0_37 = arith.constant 0 : index
    %c0_38 = arith.constant 0 : index
    %100 = vector.load %arg13[%99, %c0_37, %c0_38] : memref<2x64x32xbf16, #tpu.memory_space<vmem>>, vector<1x64x32xbf16>
    %101 = vector.shape_cast %100 : vector<1x64x32xbf16> to vector<64x32xbf16>
    %cst_39 = arith.constant dense<0.000000e+00> : vector<96x32xf32>
    %102 = tpu.matmul %98, %101, %cst_39 {dimension_numbers = #tpu.dot_dimension_numbers<[1], [0], [0], [1], [0, 0, 1, 1], [], []>} : vector<96x64xbf16>, vector<64x32xbf16>, vector<96x32xf32> -> vector<96x32xf32>
    %103 = arith.index_cast %arg1 : i32 to index
    %c0_40 = arith.constant 0 : index
    %c0_41 = arith.constant 0 : index
    %104 = vector.load %arg14[%103, %c0_40, %c0_41] : memref<2x1x32xf32, #tpu.memory_space<vmem>>, vector<1x1x32xf32>
    %105 = vector.shape_cast %104 : vector<1x1x32xf32> to vector<1x32xf32>
    %106 = vector.broadcast %105 : vector<1x32xf32> to vector<96x32xf32>
    %107 = arith.addf %102, %106 : vector<96x32xf32>
    %108 = arith.addf %107, %46 : vector<96x32xf32>
    %c0_42 = arith.constant 0 : index
    %c0_43 = arith.constant 0 : index
    %109 = vector.load %arg15[%c0_42, %c0_43] : memref<96x32xf32, #tpu.memory_space<vmem>>, vector<96x32xf32>
    tpu.vector_store %arg15[%c0_42, %c0_43], %108 {strides = array<i32>} : memref<96x32xf32, #tpu.memory_space<vmem>>, vector<96x32xf32>,
    return
  }
  func.func @transform_0(%arg0: i32, %arg1: i32) -> (i32, i32) {
    %c0_i32 = arith.constant 0 : i32
    %c0_i32_0 = arith.constant 0 : i32
    return %arg0, %c0_i32 : i32, i32
  }
  func.func @transform_1(%arg0: i32, %arg1: i32) -> (i32, i32) {
    %c0_i32 = arith.constant 0 : i32
    %c0_i32_0 = arith.constant 0 : i32
    %c0_i32_1 = arith.constant 0 : i32
    return %c0_i32, %c0_i32_0 : i32, i32
  }
  func.func @transform_2(%arg0: i32, %arg1: i32) -> (i32, i32) {
    %c0_i32 = arith.constant 0 : i32
    %c0_i32_0 = arith.constant 0 : i32
    %c0_i32_1 = arith.constant 0 : i32
    return %c0_i32, %c0_i32_0 : i32, i32
  }
  func.func @transform_3(%arg0: i32, %arg1: i32) -> (i32, i32, i32) {
    %c0_i32 = arith.constant 0 : i32
    %c0_i32_0 = arith.constant 0 : i32
    %c0_i32_1 = arith.constant 0 : i32
    %c0_i32_2 = arith.constant 0 : i32
    return %c0_i32, %c0_i32_0, %c0_i32_1 : i32, i32, i32
  }
  func.func @transform_4(%arg0: i32, %arg1: i32) -> (i32, i32, i32) {
    %c0_i32 = arith.constant 0 : i32
    %c0_i32_0 = arith.constant 0 : i32
    %c0_i32_1 = arith.constant 0 : i32
    %c0_i32_2 = arith.constant 0 : i32
    return %c0_i32, %c0_i32_0, %c0_i32_1 : i32, i32, i32
  }
  func.func @transform_5(%arg0: i32, %arg1: i32) -> (i32, i32, i32) {
    %c0_i32 = arith.constant 0 : i32
    %c0_i32_0 = arith.constant 0 : i32
    %c0_i32_1 = arith.constant 0 : i32
    %c0_i32_2 = arith.constant 0 : i32
    return %c0_i32, %c0_i32_0, %c0_i32_1 : i32, i32, i32
  }
  func.func @transform_6(%arg0: i32, %arg1: i32) -> (i32, i32, i32) {
    %c0_i32 = arith.constant 0 : i32
    %c0_i32_0 = arith.constant 0 : i32
    %c0_i32_1 = arith.constant 0 : i32
    %c0_i32_2 = arith.constant 0 : i32
    return %c0_i32, %c0_i32_0, %c0_i32_1 : i32, i32, i32
  }
  func.func @transform_7(%arg0: i32, %arg1: i32) -> (i32, i32, i32) {
    %c0_i32 = arith.constant 0 : i32
    %c0_i32_0 = arith.constant 0 : i32
    %c0_i32_1 = arith.constant 0 : i32
    %c0_i32_2 = arith.constant 0 : i32
    return %c0_i32, %c0_i32_0, %c0_i32_1 : i32, i32, i32
  }
  func.func @transform_8(%arg0: i32, %arg1: i32) -> (i32, i32, i32) {
    %c0_i32 = arith.constant 0 : i32
    %c0_i32_0 = arith.constant 0 : i32
    %c0_i32_1 = arith.constant 0 : i32
    %c0_i32_2 = arith.constant 0 : i32
    return %c0_i32, %c0_i32_0, %c0_i32_1 : i32, i32, i32
  }
  func.func @transform_9(%arg0: i32, %arg1: i32) -> (i32, i32, i32) {
    %c0_i32 = arith.constant 0 : i32
    %c0_i32_0 = arith.constant 0 : i32
    %c0_i32_1 = arith.constant 0 : i32
    %c0_i32_2 = arith.constant 0 : i32
    return %c0_i32, %c0_i32_0, %c0_i32_1 : i32, i32, i32
  }
  func.func @transform_10(%arg0: i32, %arg1: i32) -> (i32, i32, i32) {
    %c0_i32 = arith.constant 0 : i32
    %c0_i32_0 = arith.constant 0 : i32
    %c0_i32_1 = arith.constant 0 : i32
    %c0_i32_2 = arith.constant 0 : i32
    return %c0_i32, %c0_i32_0, %c0_i32_1 : i32, i32, i32
  }
  func.func @transform_11(%arg0: i32, %arg1: i32) -> (i32, i32, i32) {
    %c0_i32 = arith.constant 0 : i32
    %c0_i32_0 = arith.constant 0 : i32
    %c0_i32_1 = arith.constant 0 : i32
    %c0_i32_2 = arith.constant 0 : i32
    return %c0_i32, %c0_i32_0, %c0_i32_1 : i32, i32, i32
  }
  func.func @transform_12(%arg0: i32, %arg1: i32) -> (i32, i32, i32) {
    %c0_i32 = arith.constant 0 : i32
    %c0_i32_0 = arith.constant 0 : i32
    %c0_i32_1 = arith.constant 0 : i32
    %c0_i32_2 = arith.constant 0 : i32
    return %c0_i32, %c0_i32_0, %c0_i32_1 : i32, i32, i32
  }
  func.func @transform_13(%arg0: i32, %arg1: i32) -> (i32, i32) {
    %c0_i32 = arith.constant 0 : i32
    %c0_i32_0 = arith.constant 0 : i32
    return %arg0, %c0_i32 : i32, i32
  }
}

</mosaic_0001>

<bundles_post_ra>
// kernel: tpu_custom_call.1
= control target key start
LH: loop header
LB: loop body
LE: loop exit
PB: predicated region body
PF: predicated region fallthrough
CT: control target
= control target key end

     0   :  { %s2430_s25 = smov 0   ;;  %s2432_s26 = smov 0   ;;  %s2938_s0 = inlined_call_operand.vmem [shape: f32[192,32], index: 0, kind: input, shape index: {}]   ;;  %s2939_s1 = inlined_call_operand.vmem [shape: bf16[24,16], index: 1, kind: input, shape index: {}]   ;;  %s2940_s2 = inlined_call_operand.vmem [shape: bf16[16,24], index: 2, kind: input, shape index: {}]   ;;  %s2941_s3 = inlined_call_operand.vmem [shape: bf16[2,32,32], index: 3, kind: input, shape index: {}]   ;;  %s2942_s4 = inlined_call_operand.vmem [shape: f32[2,1,32], index: 4, kind: input, shape index: {}]   ;;  %s2943_s5 = inlined_call_operand.vmem [shape: bf16[2,32,32], index: 5, kind: input, shape index: {}]   ;;  %s2944_s6 = inlined_call_operand.vmem [shape: f32[2,1,32], index: 6, kind: input, shape index: {}]   ;;  %s2945_s7 = inlined_call_operand.vmem [shape: f32[2,1,32], index: 7, kind: input, shape index: {}]   ;;  %s2946_s8 = inlined_call_operand.vmem [shape: f32[2,1,32], index: 8, kind: input, shape index: {}]   ;;  %s2947_s9 = inlined_call_operand.vmem [shape: bf16[2,32,64], index: 9, kind: input, shape index: {}]   ;;  %s2948_s10 = inlined_call_operand.vmem [shape: f32[2,1,64], index: 10, kind: input, shape index: {}]   ;;  %s2949_s11 = inlined_call_operand.vmem [shape: bf16[2,64,32], index: 11, kind: input, shape index: {}]   ;;  %s2950_s12 = inlined_call_operand.vmem [shape: f32[2,1,32], index: 12, kind: input, shape index: {}]   ;;  %s2951_s13 = inlined_call_operand.vmem [shape: f32[192,32], index: 13, kind: output, shape index: {}]  }
   0x1   :  { %s2434_s27 = smov 0   ;;  %s2436_s28 = smov 0  }
   0x2   :  { %s2438_s29 = smov 0  }
   0x3 LB: > { %s32_s30 = sadd.s32 1, %s2349_s27  ;;  %s35_s14 = sadd.s32 1, %s2353_s28  ;;  %s2357_s29 = sphi %s2438_s29, %s23_s29   ;;  %s2353_s28 = sphi %s2436_s28, %s2955_s28   ;;  %s2349_s27 = sphi %s2434_s27, %s2954_s27   ;;  %s2345_s26 = sphi %s2432_s26, %s2953_s26   ;;  %s2341_s25 = sphi %s2430_s25, %s2952_s25  }
   0x4   : > { %p33_p0 = scmp.ge.s32.totalorder %s32_s30, 2  ;;  %p2081_p1 = scmp.ge.s32.totalorder %s2357_s29, 1 }
   0x5   : > { %p400_p2 = scmp.lt.s32.totalorder %s2357_s29, 5 }
   0x6   : > { %s2957_s30 = smov (%p33_p0, %s32_s30), 0  ;;  %s2959_s14 = smov (!%p33_p0, %s35_s14), %s2353_s28 }
   0x7   : > { %p401_p3 = pnand %p2081_p1, %p400_p2  ;;  %p37_p4 = scmp.ge.s32.totalorder %s2959_s14, 2 }
   0x8   : > { %s444_s15 = smul.u32 (!%p401_p3), 12, %s2345_s26  ;;  %p2084_p6 = scmp.ne.s32.totalorder (!%p401_p3), %s2341_s25, 0 }
   0x9   : > { %s2961_s14 = smov (%p37_p4, %s2959_s14), 0  ;;  %404 = sbr.rel (%p401_p3) target bundleno = 2136 (0x858), region = 72 }
   0xa   : > { %p445_p5 = scmp.lt.s32.totalorder (!%p401_p3), %s444_s15, 23 }
   0xe   : > { %s2963_s15 = smov (!%p445_p5, %s444_s15), 23  ;;  %460 = sbr.rel (%p2084_p6) target bundleno = 32 (0x20), region = 76 }
   0xf   : > { %s2082_s16 = sshll.u32 %s2963_s15, 3 }
  0x10   : > { %s448_s19 = scalar_lea.vmem %s2938_s0, %s2082_s16  ;;  %s2468_s22 = scalar_lea.vmem %s2951_s13, %s2082_s16 }
  0x13   : > { %v461_v0 = vld [vmem:[%s448_s19] sm:$0xff]  ;;  %vm473_vm0 = vcmask 261120   ;;  %v462_v1 = vld [vmem:[%s448_s19 + $0x8] sm:$0xff]  ;;  %v463_v2 = vld [vmem:[%s448_s19 + $0x10] sm:$0xff] }
  0x14   : > { %474 = vst.msk [vmem:[%s2468_s22] sm:$0xff] %vm473_vm0, %v461_v0  ;;  %v464_v3 = vld [vmem:[%s448_s19 + $0x18] sm:$0xff]  ;;  %v465_v4 = vld [vmem:[%s448_s19 + $0x20] sm:$0xff]  ;;  %v466_v5 = vld [vmem:[%s448_s19 + $0x28] sm:$0xff] }
  0x15   : > { %475 = vst.msk [vmem:[%s2468_s22 + $0x8] sm:$0xff] %vm473_vm0, %v462_v1  ;;  %v467_v6 = vld [vmem:[%s448_s19 + $0x30] sm:$0xff]  ;;  %v468_v7 = vld [vmem:[%s448_s19 + $0x38] sm:$0xff]  ;;  %v469_v8 = vld [vmem:[%s448_s19 + $0x40] sm:$0xff] }
  0x16   : > { %476 = vst.msk [vmem:[%s2468_s22 + $0x10] sm:$0xff] %vm473_vm0, %v463_v2  ;;  %v470_v9 = vld [vmem:[%s448_s19 + $0x48] sm:$0xff]  ;;  %v471_v10 = vld [vmem:[%s448_s19 + $0x50] sm:$0xff]  ;;  %v472_v11 = vld [vmem:[%s448_s19 + $0x58] sm:$0xff] }
  0x17   : > { %477 = vst.msk [vmem:[%s2468_s22 + $0x18] sm:$0xff] %vm473_vm0, %v464_v3 }
  0x18   : > { %478 = vst.msk [vmem:[%s2468_s22 + $0x20] sm:$0xff] %vm473_vm0, %v465_v4 }
  0x19   : > { %479 = vst.msk [vmem:[%s2468_s22 + $0x28] sm:$0xff] %vm473_vm0, %v466_v5 }
  0x1a   : > { %480 = vst.msk [vmem:[%s2468_s22 + $0x30] sm:$0xff] %vm473_vm0, %v467_v6 }
  0x1b   : > { %481 = vst.msk [vmem:[%s2468_s22 + $0x38] sm:$0xff] %vm473_vm0, %v468_v7 }
  0x1c   : > { %482 = vst.msk [vmem:[%s2468_s22 + $0x40] sm:$0xff] %vm473_vm0, %v469_v8 }
  0x1d   : > { %483 = vst.msk [vmem:[%s2468_s22 + $0x48] sm:$0xff] %vm473_vm0, %v470_v9 }
  0x1e   : > { %484 = vst.msk [vmem:[%s2468_s22 + $0x50] sm:$0xff] %vm473_vm0, %v471_v10 }
  0x1f   : > { %485 = vst.msk [vmem:[%s2468_s22 + $0x58] sm:$0xff] %vm473_vm0, %v472_v11 }
  0x20 PF: > { %v2496_v12 = vld [vmem:[%s2468_s22] sm:$0xff]  ;;  %v2500_v13 = vld [vmem:[%s2468_s22 + $0x18] sm:$0xff]  ;;  %v2508_v15 = vld [vmem:[%s2468_s22 + $0x8] sm:$0xff]  ;;  %vm671_vm1 = vcmask 1043456   ;;  %vm646_vm2 = vcmask 195584   ;;  %s863_s18 = scalar_lea.vmem %s2942_s4, %s2341_s25  ;;  %s2562_s19 = sshll.u32 %s2341_s25, 4 }
  0x21   : > { %498 = vxpose.xlu0.b32.start [1/3] (short) (narrow) %v2496_v12, 32  ;;  %530 = vxpose.xlu1.b32.start [1/3] (short) (narrow) %v2500_v13, 32  ;;  %v2504_v14 = vld [vmem:[%s2468_s22 + $0x30] sm:$0xff]  ;;  %v2511_v16 = vld [vmem:[%s2468_s22 + $0x20] sm:$0xff]  ;;  %v2519_v18 = vld [vmem:[%s2468_s22 + $0x28] sm:$0xff]  ;;  %s858_s23 = scalar_lea.vmem %s2941_s3, %s2562_s19  ;;  %s935_s15 = scalar_lea.vmem %s2943_s5, %s2562_s19  ;;  %vm880_vm3 = vcmask 261120  }
  0x22   : > { %562 = vxpose.xlu2.b32.start [1/3] (short) (narrow) %v2504_v14, 32  ;;  %v2516_v17 = vld [vmem:[%s2468_s22 + $0x10] sm:$0xff]  ;;  %v636_v19 = vld [vmem:[%s2939_s1 + $0x8] sm:$0xf]  ;;  %v2527_v21 = vld [vmem:[%s2468_s22 + $0x38] sm:$0xff]  ;;  %s940_s20 = scalar_lea.vmem %s2944_s6, %s2341_s25  ;;  %vm1142_vm4 = vcmask 130048   ;;  %s1639_s16 = scalar_lea.vmem %s2945_s7, %s2341_s25 }
  0x23   : > { %v642_v20 = vunpack.c.l.b16 %v636_v19  ;;  %v2177_v24 = vld [vmem:[%s2939_s1] sm:$0xff]  ;;  %v2180_v0 = vld [vmem:[%s858_s23 + $0x8] sm:$0xff]  ;;  %s1656_s21 = scalar_lea.vmem %s2946_s8, %s2341_s25  ;;  %s1680_s24 = scalar_lea.vmem %s2947_s9, %s2562_s19 }
  0x24   : > { %v2534_v25 = vld [vmem:[%s2468_s22 + $0x40] sm:$0xff]  ;;  %v2538_v26 = vld [vmem:[%s2468_s22 + $0x48] sm:$0xff]  ;;  %899 = vmatpush.bf16.msra.mxu1 %v2180_v0  ;;  %2193 = vmatpush.bf16.msra.mxu3 %v2180_v0 }
  0x25   : > { %v644_v22 = vpack.c.b16 %v642_v20, %v642_v20  ;;  %v2542_v27 = vld [vmem:[%s2468_s22 + $0x50] sm:$0xff]  ;;  %v2179_v1 = vld [vmem:[%s858_s23] sm:$0xff]  ;;  %v2183_v5 = vld [vmem:[%s935_s15 + $0x8] sm:$0xff]  ;;  %s1685_s23 = scalar_lea.vmem %s2948_s10, %s2341_s25 }
  0x26   : > { %v2546_v28 = vld [vmem:[%s2468_s22 + $0x58] sm:$0xff]  ;;  %2195 = vmatpush.bf16.msra.mxu2 %v2183_v5  ;;  %v2182_v8 = vld [vmem:[%s935_s15] sm:$0xff] }
  0x27   : > { %v673_v23 = vsel %vm671_vm1, %v644_v22, 0 }
  0x28   : > { %681 = vmatpush.bf16.msra.mxu0 %v673_v23  ;;  %900 = vmatpush.bf16.msra.mxu1 %v2179_v1 }
  0x29   : > { %499 = vxpose.xlu0.b32.cont [2/3] (short) (narrow) %v2508_v15, 32  ;;  %531 = vxpose.xlu1.b32.cont [2/3] (short) (narrow) %v2511_v16, 32 }
  0x2a   : > { %563 = vxpose.xlu2.b32.cont [2/3] (short) (narrow) %v2527_v21, 32  ;;  %2194 = vmatpush.bf16.msra.mxu3 %v2179_v1 }
  0x2b   : > { %2196 = vmatpush.bf16.msra.mxu2 %v2182_v8 }
  0x2c   : > { %682 = vmatpush.bf16.msra.mxu0 %v2177_v24 }
  0x30   : > { %975 = vmatpush.bf16.msrb.mxu0 %v2183_v5 }
  0x31   : > { %500 = vxpose.xlu0.b32.end [3/3] (short) (narrow) %v2516_v17, 32  ;;  %532 = vxpose.xlu1.b32.end [3/3] (short) (narrow) %v2519_v18, 32 }
  0x32   : > { %564 = vxpose.xlu2.b32.end [3/3] (short) (narrow) %v2534_v25, 32 }
  0x34   : > { %976 = vmatpush.bf16.msrb.mxu0 %v2182_v8 }
  0x41   : > { %594 = vxpose.xlu0.b32.start [1/3] (short) (narrow) %v2538_v26, 32 }
  0x49   : > { %595 = vxpose.xlu0.b32.cont [2/3] (short) (narrow) %v2542_v27, 32 }
  0x51   : > { %596 = vxpose.xlu0.b32.end [3/3] (short) (narrow) %v2546_v28, 32 }
  0xbb   : > { %v578_v41 = vpop.trf.xlu2 }
  0xc3   : > { %v579_v42 = vpop.trf.xlu2 }
  0xc4   : > { %v630_v43 = vpack.c.bf16 %v579_v42, %v578_v41 }
  0xc5   : > { %v514_v29 = vpop.trf.xlu0  ;;  %v546_v34 = vpop.trf.xlu1 }
  0xcb   : > { %v580_v44 = vpop.trf.xlu2 }
  0xcd   : > { %v515_v30 = vpop.trf.xlu0  ;;  %v547_v36 = vpop.trf.xlu1 }
  0xce   : > { %v626_v31 = vpack.c.bf16 %v515_v30, %v514_v29  ;;  %v628_v37 = vpack.c.bf16 %v547_v36, %v546_v34  ;;  %v2263_v29 = vld [vmem:[%s863_s18] ss:$0 sm:$0xff] }
  0xd0   : > { %2089 = vmatmul.msk.bf16.vlgmr.msra.gmra.mxu0 %vm646_vm2, %v626_v31 }
  0xd3   : > { %v581_v46 = vpop.trf.xlu2 }
  0xd4   : > { %v631_v47 = vpack.c.bf16 %v581_v46, %v580_v44 }
  0xd5   : > { %v516_v32 = vpop.trf.xlu0  ;;  %v548_v38 = vpop.trf.xlu1 }
  0xdd   : > { %v517_v33 = vpop.trf.xlu0  ;;  %v549_v39 = vpop.trf.xlu1 }
  0xde   : > { %v627_v35 = vpack.c.bf16 %v517_v33, %v516_v32  ;;  %v629_v40 = vpack.c.bf16 %v549_v39, %v548_v38 }
  0xe0   : > { %2090 = vmatmul.msk.bf16.gmra.mxu0 %vm646_vm2, %v627_v35 }
  0xe5   : > { %v610_v49 = vpop.trf.xlu0 }
  0xed   : > { %v611_v51 = vpop.trf.xlu0 }
  0xee   : > { %v632_v52 = vpack.c.bf16 %v611_v51, %v610_v49  ;;  %v2264_v49 = vld [vmem:[%s940_s20] ss:$0 sm:$0xff]  ;;  %s1884_s20 = scalar_lea.vmem %s2950_s12, %s2341_s25 }
  0xf0   : > { %2091 = vmatmul.msk.bf16.gmra.mxu0 %vm646_vm2, %v628_v37 }
  0xf5   : > { %v612_v54 = vpop.trf.xlu0 }
  0xfd   : > { %v613_v56 = vpop.trf.xlu0 }
  0xfe   : > { %v633_v57 = vpack.c.bf16 %v613_v56, %v612_v54 }
 0x100   : > { %2092 = vmatmul.msk.bf16.gmra.mxu0 %vm646_vm2, %v629_v40 }
 0x110   : > { %2093 = vmatmul.msk.bf16.gmra.mxu0 %vm646_vm2, %v630_v43 }
 0x120   : > { %2094 = vmatmul.msk.bf16.gmra.mxu0 %vm646_vm2, %v631_v47 }
 0x130   : > { %2095 = vmatmul.msk.bf16.gmra.mxu0 %vm646_vm2, %v632_v52 }
 0x140   : > { %2096 = vmatmul.msk.bf16.gmra.mxu0 %vm646_vm2, %v633_v57 }
 0x14d   : > { %v684_v45 = vpop.f32.mrf.mxu0 }
 0x14e   : > { %724 = vxpose.xlu1.b32.start [1/4] (short) (narrow) %v684_v45, 16 }
 0x155   : > { %v686_v48 = vpop.f32.mrf.mxu0 }
 0x156   : > { %725 = vxpose.xlu1.b32.cont [2/4] (short) (narrow) %v686_v48, 16 }
 0x15d   : > { %v689_v50 = vpop.f32.mrf.mxu0 }
 0x15e   : > { %726 = vxpose.xlu1.b32.cont [3/4] (short) (narrow) %v689_v50, 16 }
 0x165   : > { %v691_v53 = vpop.f32.mrf.mxu0 }
 0x166   : > { %727 = vxpose.xlu1.b32.end [4/4] (short) (narrow) %v691_v53, 16 }
 0x16d   : > { %v694_v55 = vpop.f32.mrf.mxu0 }
 0x16e   : > { %756 = vxpose.xlu2.b32.start [1/4] (short) (narrow) %v694_v55, 16 }
 0x175   : > { %v696_v58 = vpop.f32.mrf.mxu0 }
 0x176   : > { %757 = vxpose.xlu2.b32.cont [2/4] (short) (narrow) %v696_v58, 16 }
 0x17d   : > { %v699_v59 = vpop.f32.mrf.mxu0 }
 0x17e   : > { %758 = vxpose.xlu2.b32.cont [3/4] (short) (narrow) %v699_v59, 16 }
 0x185   : > { %v701_v60 = vpop.f32.mrf.mxu0 }
 0x186   : > { %759 = vxpose.xlu2.b32.end [4/4] (short) (narrow) %v701_v60, 16  ;;  %v2184_v60 = vld [vmem:[%s2940_s2] sm:$0xff] }
 0x187   : > { %1174 = vmatpush.bf16.msrb.mxu3 %v2184_v60 }
 0x18d   : > { %v704_v61 = vpop.f32.mrf.mxu0 }
 0x18e   : > { %788 = vxpose.xlu0.b32.start [1/4] (short) (narrow) %v704_v61, 16 }
 0x195   : > { %v706_v62 = vpop.f32.mrf.mxu0 }
 0x196   : > { %789 = vxpose.xlu0.b32.cont [2/4] (short) (narrow) %v706_v62, 16 }
 0x19d   : > { %v709_v63 = vpop.f32.mrf.mxu0 }
 0x19e   : > { %790 = vxpose.xlu0.b32.cont [3/4] (short) (narrow) %v709_v63, 16 }
 0x1a5   : > { %v711_v2 = vpop.f32.mrf.mxu0 }
 0x1a6   : > { %791 = vxpose.xlu0.b32.end [4/4] (short) (narrow) %v711_v2, 16 }
 0x1ad   : > { %v714_v3 = vpop.f32.mrf.mxu0 }
 0x1ae   : > { %820 = vxpose.xlu1.b32.start [1/4] (short) (narrow) %v714_v3, 16 }
 0x1b5   : > { %v716_v4 = vpop.f32.mrf.mxu0 }
 0x1b6   : > { %821 = vxpose.xlu1.b32.cont [2/4] (short) (narrow) %v716_v4, 16 }
 0x1bd   : > { %v719_v6 = vpop.f32.mrf.mxu0 }
 0x1be   : > { %822 = vxpose.xlu1.b32.cont [3/4] (short) (narrow) %v719_v6, 16 }
 0x1c5   : > { %v721_v9 = vpop.f32.mrf.mxu0 }
 0x1c6   : > { %823 = vxpose.xlu1.b32.end [4/4] (short) (narrow) %v721_v9, 16 }
 0x1f2   : > { %v740_v7 = vpop.trf.xlu1 }
 0x1fa   : > { %v741_v10 = vpop.trf.xlu1 }
 0x1fb   : > { %v852_v11 = vpack.c.bf16 %v741_v10, %v740_v7 }
 0x1fd   : > { %2107 = vmatmul.msk.bf16.vlgmr.msra.gmra.mxu1 %vm880_vm3, %v852_v11 }
 0x207   : > { %v772_v19 = vpop.trf.xlu2 }
 0x20f   : > { %v773_v20 = vpop.trf.xlu2 }
 0x210   : > { %v853_v22 = vpack.c.bf16 %v773_v20, %v772_v19 }
 0x212   : > { %2108 = vmatmul.msk.bf16.gmra.mxu1 %vm880_vm3, %v853_v22 }
 0x232   : > { %v804_v24 = vpop.trf.xlu0 }
 0x23a   : > { %v805_v32 = vpop.trf.xlu0 }
 0x23b   : > { %v854_v34 = vpack.c.bf16 %v805_v32, %v804_v24 }
 0x23d   : > { %2109 = vmatmul.msk.bf16.gmra.mxu1 %vm880_vm3, %v854_v34 }
 0x252   : > { %v836_v35 = vpop.trf.xlu1 }
 0x25a   : > { %v837_v39 = vpop.trf.xlu1 }
 0x25b   : > { %v855_v40 = vpack.c.bf16 %v837_v39, %v836_v35 }
 0x25d   : > { %2110 = vmatmul.msk.bf16.vlgmr.msra.gmra.mxu3 %vm880_vm3, %v855_v40 }
 0x27a   : > { %v902_v23 = vpop.f32.mrf.mxu1 }
 0x27b   : > { %v903_v30 = vadd.f32 %v2263_v29, %v902_v23 }
 0x27d   : > { %v922_v36 = vmax.f32 %v903_v30, 0.0 }
 0x282   : > { %v904_v31 = vpop.f32.mrf.mxu1 }
 0x283   : > { %v905_v33 = vadd.f32 %v2263_v29, %v904_v31 }
 0x285   : > { %v923_v37 = vmax.f32 %v905_v33, 0.0 }
 0x287   : > { %v930_v38 = vpack.c.bf16 %v923_v37, %v922_v36 }
 0x289   : > { %2120 = vmatmul.msk.bf16.vlgmr.msrb.gmra.mxu0 %vm880_vm3, %v930_v38 }
 0x28f   : > { %v907_v41 = vpop.f32.mrf.mxu1 }
 0x290   : > { %v908_v42 = vadd.f32 %v2263_v29, %v907_v41 }
 0x292   : > { %v924_v45 = vmax.f32 %v908_v42, 0.0 }
 0x297   : > { %v909_v43 = vpop.f32.mrf.mxu1 }
 0x298   : > { %v910_v44 = vadd.f32 %v2263_v29, %v909_v43 }
 0x29a   : > { %v925_v46 = vmax.f32 %v910_v44, 0.0 }
 0x29c   : > { %v931_v47 = vpack.c.bf16 %v925_v46, %v924_v45 }
 0x29e   : > { %2121 = vmatmul.msk.bf16.vlgmr.msra.gmra.mxu2 %vm880_vm3, %v931_v47 }
 0x2ba   : > { %v912_v48 = vpop.f32.mrf.mxu1 }
 0x2bb   : > { %v913_v52 = vadd.f32 %v2263_v29, %v912_v48 }
 0x2bd   : > { %v926_v54 = vmax.f32 %v913_v52, 0.0 }
 0x2c2   : > { %v914_v53 = vpop.f32.mrf.mxu1 }
 0x2c3   : > { %v915_v55 = vadd.f32 %v2263_v29, %v914_v53 }
 0x2c5   : > { %v927_v56 = vmax.f32 %v915_v55, 0.0 }
 0x2c7   : > { %v932_v59 = vpack.c.bf16 %v927_v56, %v926_v54 }
 0x2c9   : > { %2122 = vmatmul.msk.bf16.gmra.mxu2 %vm880_vm3, %v932_v59 }
 0x2e0   : > { %v917_v61 = vpop.f32.mrf.mxu3 }
 0x2e1   : > { %v918_v62 = vadd.f32 %v2263_v29, %v917_v61 }
 0x2e3   : > { %v928_v0 = vmax.f32 %v918_v62, 0.0 }
 0x2e8   : > { %v919_v63 = vpop.f32.mrf.mxu3 }
 0x2e9   : > { %v920_v1 = vadd.f32 %v2263_v29, %v919_v63 }
 0x2eb   : > { %v929_v2 = vmax.f32 %v920_v1, 0.0 }
 0x2ed   : > { %v933_v3 = vpack.c.bf16 %v929_v2, %v928_v0  ;;  %v1344_v2 = vmul.f32 2.0, %v2496_v12 }
 0x2ef   : > { %2123 = vmatmul.msk.bf16.gmra.mxu2 %vm880_vm3, %v933_v3 }
 0x306   : > { %v978_v50 = vpop.f32.mrf.mxu0 }
 0x307   : > { %v979_v51 = vadd.f32 %v2264_v49, %v978_v50 }
 0x309   : > { %998 = vxpose.xlu2.b32.start [1/2] (short) (narrow) %v979_v51, 32 }
 0x30e   : > { %v980_v57 = vpop.f32.mrf.mxu0 }
 0x30f   : > { %v981_v58 = vadd.f32 %v2264_v49, %v980_v57 }
 0x311   : > { %999 = vxpose.xlu2.b32.end [2/2] (short) (narrow) %v981_v58, 32 }
 0x321   : > { %v983_v4 = vpop.f32.mrf.mxu2 }
 0x322   : > { %v984_v5 = vadd.f32 %v2264_v49, %v983_v4 }
 0x329   : > { %1030 = vxpose.xlu2.b32.start [1/2] (short) (narrow) %v984_v5, 32  ;;  %v985_v6 = vpop.f32.mrf.mxu2 }
 0x32a   : > { %v986_v7 = vadd.f32 %v2264_v49, %v985_v6  ;;  %v1345_v6 = vmul.f32 2.0, %v2508_v15 }
 0x331   : > { %1031 = vxpose.xlu2.b32.end [2/2] (short) (narrow) %v986_v7, 32 }
 0x34c   : > { %v988_v8 = vpop.f32.mrf.mxu2 }
 0x34d   : > { %v989_v11 = vadd.f32 %v2264_v49, %v988_v8 }
 0x354   : > { %v990_v9 = vpop.f32.mrf.mxu2 }
 0x355   : > { %v991_v29 = vadd.f32 %v2264_v49, %v990_v9 }
 0x372   : > { %v993_v19 = vpop.f32.mrf.mxu2 }
 0x373   : > { %v994_v20 = vadd.f32 %v2264_v49, %v993_v19 }
 0x375   : > { %v2239_v22 = vpack.i.bf16 %v994_v20, %v989_v11  ;;  %v1347_v20 = vmul.f32 2.0, %v2500_v13 }
 0x377   : > { %2240 = vxpose.xlu0.b32.start [1/2] (short) (narrow) %v2239_v22, 32 }
 0x37a   : > { %v995_v30 = vpop.f32.mrf.mxu2 }
 0x37b   : > { %v996_v31 = vadd.f32 %v2264_v49, %v995_v30 }
 0x37d   : > { %v2241_v32 = vpack.i.bf16 %v996_v31, %v991_v29  ;;  %v1349_v31 = vmul.f32 2.0, %v2519_v18 }
 0x37f   : > { %2242 = vxpose.xlu0.b32.end [2/2] (short) (narrow) %v2241_v32, 32 }
 0x3a2   : > { %v1014_v10 = vpop.trf.xlu2 }
 0x3aa   : > { %v1015_v23 = vpop.trf.xlu2 }
 0x3ab   : > { %v1126_v24 = vpack.c.bf16 %v1015_v23, %v1014_v10  ;;  %v1346_v10 = vmul.f32 2.0, %v2516_v17 }
 0x3ad   : > { %2128 = vmatmul.msk.bf16.vlgmr.msrb.gmra.mxu3 %vm1142_vm4, %v1126_v24  ;;  %v1348_v24 = vmul.f32 2.0, %v2511_v16 }
 0x3b2   : > { %v1016_v33 = vpop.trf.xlu2 }
 0x3ba   : > { %v1017_v34 = vpop.trf.xlu2 }
 0x3bb   : > { %v1127_v35 = vpack.c.bf16 %v1017_v34, %v1016_v33 }
 0x3bd   : > { %2129 = vmatmul.msk.bf16.gmra.mxu3 %vm1142_vm4, %v1127_v35 }
 0x3c2   : > { %v1046_v36 = vpop.trf.xlu2 }
 0x3ca   : > { %v1047_v37 = vpop.trf.xlu2 }
 0x3cb   : > { %v1128_v38 = vpack.c.bf16 %v1047_v37, %v1046_v36 }
 0x3cd   : > { %2130 = vmatmul.msk.bf16.gmra.mxu3 %vm1142_vm4, %v1128_v38 }
 0x3d2   : > { %v1048_v39 = vpop.trf.xlu2 }
 0x3da   : > { %v1049_v40 = vpop.trf.xlu2 }
 0x3db   : > { %v1129_v41 = vpack.c.bf16 %v1049_v40, %v1048_v39  ;;  %v2359_v40 = vmov 32.0  }
 0x3dc   : > { %2269 = vrcp.f32 %v2359_v40 }
 0x3dd   : > { %2131 = vmatmul.msk.bf16.gmra.mxu3 %vm1142_vm4, %v1129_v41 }
 0x3e2   : > { %v2270_v41 = vpop.eup %2269 }
 0x3e3   : > { %vm1409_vm5 = vweird.f32 %v2270_v41 }
 0x41b   : > { %v2243_v46 = vpop.trf.xlu0 }
 0x41c   : > { %v2244_v48 = vunpack.i.l.bf16 %v2243_v46  ;;  %v2247_v60 = vunpack.i.h.bf16 %v2243_v46 }
 0x423   : > { %v2248_v49 = vpop.trf.xlu0 }
 0x424   : > { %v2249_v50 = vunpack.i.l.bf16 %v2248_v49  ;;  %v2252_v61 = vunpack.i.h.bf16 %v2248_v49 }
 0x426   : > { %v1130_v52 = vpack.c.bf16 %v2249_v50, %v2244_v48  ;;  %v1132_v62 = vpack.c.bf16 %v2252_v61, %v2247_v60  ;;  %v1351_v60 = vmul.f32 2.0, %v2527_v21 }
 0x428   : > { %2132 = vmatmul.msk.bf16.gmra.mxu3 %vm1142_vm4, %v1130_v52 }
 0x42b   : > { %v2253_v53 = vpop.trf.xlu0 }
 0x42c   : > { %v2254_v55 = vunpack.i.l.bf16 %v2253_v53  ;;  %v2257_v63 = vunpack.i.h.bf16 %v2253_v53 }
 0x430   : > { %v1176_v42 = vpop.f32.mrf.mxu3 }
 0x431   : > { %1216 = vxpose.xlu1.b32.start [1/4] (short) (narrow) %v1176_v42, 24  ;;  %v1405_v42 = vmul.f32 32.0, %v2270_v41 }
 0x433   : > { %v2258_v56 = vpop.trf.xlu0 }
 0x434   : > { %v2259_v57 = vunpack.i.l.bf16 %v2258_v56  ;;  %v2262_v0 = vunpack.i.h.bf16 %v2258_v56 }
 0x436   : > { %v1131_v59 = vpack.c.bf16 %v2259_v57, %v2254_v55  ;;  %v1133_v1 = vpack.c.bf16 %v2262_v0, %v2257_v63  ;;  %v1350_v55 = vmul.f32 2.0, %v2504_v14  ;;  %v1353_v63 = vmul.f32 2.0, %v2538_v26 }
 0x437   : > { %v1352_v14 = vmul.f32 2.0, %v2534_v25 }
 0x438   : > { %v1178_v43 = vpop.f32.mrf.mxu3  ;;  %2133 = vmatmul.msk.bf16.gmra.mxu3 %vm1142_vm4, %v1131_v59 }
 0x439   : > { %1217 = vxpose.xlu1.b32.cont [2/4] (short) (narrow) %v1178_v43, 24  ;;  %v1406_v43 = vsub.f32 1.0, %v1405_v42 }
 0x440   : > { %v1181_v44 = vpop.f32.mrf.mxu3 }
 0x441   : > { %1218 = vxpose.xlu1.b32.cont [3/4] (short) (narrow) %v1181_v44, 24 }
 0x448   : > { %v1183_v45 = vpop.f32.mrf.mxu3  ;;  %2134 = vmatmul.msk.bf16.gmra.mxu3 %vm1142_vm4, %v1132_v62 }
 0x449   : > { %1219 = vxpose.xlu1.b32.end [4/4] (short) (narrow) %v1183_v45, 24  ;;  %v1407_v45 = vmul.f32 %v2270_v41, %v1406_v43 }
 0x44b   : > { %v1408_v46 = vadd.f32 %v2270_v41, %v1407_v45 }
 0x44d   : > { %v2630_v48 = vsel %vm1409_vm5, %v2270_v41, %v1408_v46 }
 0x450   : > { %v1186_v47 = vpop.f32.mrf.mxu3 }
 0x451   : > { %1248 = vxpose.xlu0.b32.start [1/4] (short) (narrow) %v1186_v47, 24 }
 0x458   : > { %v1188_v51 = vpop.f32.mrf.mxu3  ;;  %2135 = vmatmul.msk.bf16.gmra.mxu3 %vm1142_vm4, %v1133_v1 }
 0x459   : > { %1249 = vxpose.xlu0.b32.cont [2/4] (short) (narrow) %v1188_v51, 24 }
 0x460   : > { %v1191_v54 = vpop.f32.mrf.mxu3 }
 0x461   : > { %1250 = vxpose.xlu0.b32.cont [3/4] (short) (narrow) %v1191_v54, 24 }
 0x468   : > { %v1193_v58 = vpop.f32.mrf.mxu3 }
 0x469   : > { %1251 = vxpose.xlu0.b32.end [4/4] (short) (narrow) %v1193_v58, 24 }
 0x4ab   : > { %v1196_v32 = vpop.f32.mrf.mxu3 }
 0x4b3   : > { %v1198_v35 = vpop.f32.mrf.mxu3 }
 0x4bb   : > { %v1201_v36 = vpop.f32.mrf.mxu3 }
 0x4c3   : > { %v1203_v16 = vpop.f32.mrf.mxu3 }
 0x4cb   : > { %v1206_v37 = vpop.f32.mrf.mxu3 }
 0x4d3   : > { %v1208_v38 = vpop.f32.mrf.mxu3 }
 0x4d5   : > { %v1232_v3 = vpop.trf.xlu1 }
 0x4d6   : > { %v2601_v4 = vadd.f32 %v1344_v2, %v1232_v3 }
 0x4d8   : > { %v1368_v5 = vsel %vm880_vm3, %v2601_v4, 0.0 }
 0x4d9   : > { %1369 = vadd.xlane.f32.xlu2 %v1368_v5 }
 0x4db   : > { %v1211_v39 = vpop.f32.mrf.mxu3 }
 0x4dd   : > { %v1233_v7 = vpop.trf.xlu1 }
 0x4de   : > { %v2606_v8 = vadd.f32 %v1345_v6, %v1233_v7 }
 0x4e0   : > { %v1371_v9 = vsel %vm880_vm3, %v2606_v8, 0.0 }
 0x4e1   : > { %1372 = vadd.xlane.f32.xlu1 %v1371_v9 }
 0x4e3   : > { %v1213_v18 = vpop.f32.mrf.mxu3 }
 0x4e5   : > { %v1234_v11 = vpop.trf.xlu1 }
 0x4e6   : > { %v2611_v12 = vadd.f32 %v1346_v10, %v1234_v11 }
 0x4e8   : > { %v1374_v19 = vsel %vm880_vm3, %v2611_v12, 0.0 }
 0x4e9   : > { %1375 = vadd.xlane.f32.xlu0 %v1374_v19 }
 0x4f5   : > { %v1264_v22 = vpop.trf.xlu0 }
 0x4f6   : > { %v2616_v15 = vadd.f32 %v1347_v20, %v1264_v22 }
 0x4f8   : > { %v1377_v23 = vsel %vm880_vm3, %v2616_v15, 0.0 }
 0x4f9   : > { %1378 = vadd.xlane.f32.xlu1 %v1377_v23 }
 0x4fd   : > { %v1265_v29 = vpop.trf.xlu0 }
 0x4fe   : > { %v2621_v17 = vadd.f32 %v1348_v24, %v1265_v29 }
 0x500   : > { %v1380_v30 = vsel %vm880_vm3, %v2621_v17, 0.0 }
 0x501   : > { %1381 = vadd.xlane.f32.xlu2 %v1380_v30 }
 0x505   : > { %v1266_v13 = vpop.trf.xlu0 }
 0x506   : > { %v2626_v33 = vadd.f32 %v1349_v31, %v1266_v13 }
 0x508   : > { %v1383_v34 = vsel %vm880_vm3, %v2626_v33, 0.0 }
 0x509   : > { %1384 = vadd.xlane.f32.xlu2 %v1383_v34 }
 0x532   : > { %1312 = vxpose.xlu2.b32.start [1/4] (short) (narrow) %v1206_v37, 24 }
 0x533   : > { %1280 = vxpose.xlu1.b32.start [1/4] (short) (narrow) %v1196_v32, 24 }
 0x53a   : > { %1313 = vxpose.xlu2.b32.cont [2/4] (short) (narrow) %v1208_v38, 24  ;;  %v1355_v38 = vmul.f32 2.0, %v2546_v28 }
 0x53b   : > { %1281 = vxpose.xlu1.b32.cont [2/4] (short) (narrow) %v1198_v35, 24  ;;  %v1354_v35 = vmul.f32 2.0, %v2542_v27 }
 0x542   : > { %1314 = vxpose.xlu2.b32.cont [3/4] (short) (narrow) %v1211_v39, 24 }
 0x543   : > { %1282 = vxpose.xlu1.b32.cont [3/4] (short) (narrow) %v1201_v36, 24 }
 0x54a   : > { %1315 = vxpose.xlu2.b32.end [4/4] (short) (narrow) %v1213_v18, 24 }
 0x54b   : > { %1283 = vxpose.xlu1.b32.end [4/4] (short) (narrow) %v1203_v16, 24 }
 0x54c   : > { %v1370_v44 = vpop.xlane.xlu2 %1369 }
 0x54d   : > { %v1411_v3 = vmul.f32 %v2630_v48, %v1370_v44 }
 0x54f   : > { %v2667_v7 = vsub.f32 %v2601_v4, %v1411_v3 }
 0x551   : > { %v1435_v9 = vmul.f32 %v2667_v7, %v2667_v7 }
 0x553   : > { %v1447_v11 = vsel %vm880_vm3, %v1435_v9, 0.0 }
 0x554   : > { %v1373_v53 = vpop.xlane.xlu1 %1372 }
 0x555   : > { %v1412_v25 = vmul.f32 %v2630_v48, %v1373_v53 }
 0x557   : > { %v2675_v10 = vsub.f32 %v2606_v8, %v1412_v25 }
 0x559   : > { %v1436_v22 = vmul.f32 %v2675_v10, %v2675_v10 }
 0x55b   : > { %v1450_v24 = vsel %vm880_vm3, %v1436_v22, 0.0 }
 0x55c   : > { %v1376_v19 = vpop.xlane.xlu0 %1375 }
 0x55d   : > { %v1413_v20 = vmul.f32 %v2630_v48, %v1376_v19 }
 0x55f   : > { %v2682_v23 = vsub.f32 %v2611_v12, %v1413_v20 }
 0x561   : > { %v1437_v30 = vmul.f32 %v2682_v23, %v2682_v23 }
 0x563   : > { %v1453_v32 = vsel %vm880_vm3, %v1437_v30, 0.0 }
 0x56c   : > { %v1379_v54 = vpop.xlane.xlu1 %1378 }
 0x56d   : > { %v1414_v29 = vmul.f32 %v2630_v48, %v1379_v54 }
 0x56f   : > { %v2689_v31 = vsub.f32 %v2616_v15, %v1414_v29 }
 0x571   : > { %v1438_v13 = vmul.f32 %v2689_v31, %v2689_v31 }
 0x573   : > { %v1456_v36 = vsel %vm880_vm3, %v1438_v13, 0.0 }
 0x574   : > { %v1382_v47 = vpop.xlane.xlu2 %1381 }
 0x575   : > { %v1415_v49 = vmul.f32 %v2630_v48, %v1382_v47 }
 0x577   : > { %v2634_v50 = vsub.f32 %v2621_v17, %v1415_v49 }
 0x579   : > { %v1439_v51 = vmul.f32 %v2634_v50, %v2634_v50 }
 0x57b   : > { %v1459_v52 = vsel %vm880_vm3, %v1439_v51, 0.0 }
 0x57c   : > { %v1385_v58 = vpop.xlane.xlu2 %1384 }
 0x57d   : > { %v1416_v40 = vmul.f32 %v2630_v48, %v1385_v58 }
 0x57f   : > { %v2707_v27 = vsub.f32 %v2626_v33, %v1416_v40 }
 0x581   : > { %v1440_v42 = vmul.f32 %v2707_v27, %v2707_v27 }
 0x583   : > { %v1462_v43 = vsel %vm880_vm3, %v1440_v42, 0.0 }
 0x5bb   : > { %1460 = vadd.xlane.f32.xlu2 %v1459_v52 }
 0x5cb   : > { %v1328_v0 = vpop.trf.xlu2 }
 0x5cc   : > { %v2659_v2 = vadd.f32 %v1353_v63, %v1328_v0  ;;  %v2187_v63 = vld [vmem:[%s1680_s24 + $0x8] sm:$0xff] }
 0x5cd   : > { %1726 = vmatpush.bf16.msrb.mxu1 %v2187_v63 }
 0x5ce   : > { %v1395_v21 = vsel %vm880_vm3, %v2659_v2, 0.0 }
 0x5d3   : > { %v1329_v34 = vpop.trf.xlu2 }
 0x5d4   : > { %v2696_v16 = vadd.f32 %v1354_v35, %v1329_v34 }
 0x5d6   : > { %v1398_v37 = vsel %vm880_vm3, %v2696_v16, 0.0 }
 0x5d7   : > { %v1296_v56 = vpop.trf.xlu1 }
 0x5d8   : > { %v2648_v57 = vadd.f32 %v1350_v55, %v1296_v56 }
 0x5da   : > { %v1386_v59 = vsel %vm880_vm3, %v2648_v57, 0.0 }
 0x5db   : > { %1387 = vadd.xlane.f32.xlu0 %v1386_v59  ;;  %v1330_v39 = vpop.trf.xlu2 }
 0x5dc   : > { %v2701_v18 = vadd.f32 %v1355_v38, %v1330_v39 }
 0x5de   : > { %v1401_v41 = vsel %vm880_vm3, %v2701_v18, 0.0 }
 0x5df   : > { %v1297_v61 = vpop.trf.xlu1 }
 0x5e0   : > { %v2653_v62 = vadd.f32 %v1351_v60, %v1297_v61 }
 0x5e2   : > { %v1389_v1 = vsel %vm880_vm3, %v2653_v62, 0.0 }
 0x5e3   : > { %1390 = vadd.xlane.f32.xlu0 %v1389_v1 }
 0x5e7   : > { %v1298_v5 = vpop.trf.xlu1 }
 0x5e8   : > { %v2662_v6 = vadd.f32 %v1352_v14, %v1298_v5  ;;  %v2186_v5 = vld [vmem:[%s1680_s24] sm:$0xff] }
 0x5e9   : > { %1727 = vmatpush.bf16.msrb.mxu1 %v2186_v5 }
 0x5ea   : > { %v1392_v26 = vsel %vm880_vm3, %v2662_v6, 0.0 }
 0x5eb   : > { %1393 = vadd.xlane.f32.xlu1 %v1392_v26  ;;  %1396 = vadd.xlane.f32.xlu0 %v1395_v21 }
 0x5f3   : > { %1448 = vadd.xlane.f32.xlu0 %v1447_v11 }
 0x5fb   : > { %1451 = vadd.xlane.f32.xlu0 %v1450_v24 }
 0x603   : > { %1454 = vadd.xlane.f32.xlu0 %v1453_v32 }
 0x60b   : > { %1457 = vadd.xlane.f32.xlu0 %v1456_v36 }
 0x613   : > { %1399 = vadd.xlane.f32.xlu0 %v1398_v37 }
 0x61b   : > { %1402 = vadd.xlane.f32.xlu0 %v1401_v41 }
 0x623   : > { %1463 = vadd.xlane.f32.xlu0 %v1462_v43 }
 0x62e   : > { %v1461_v39 = vpop.xlane.xlu2 %1460 }
 0x64e   : > { %v1388_v28 = vpop.xlane.xlu0 %1387 }
 0x64f   : > { %v1417_v44 = vmul.f32 %v2630_v48, %v1388_v28 }
 0x651   : > { %v2714_v45 = vsub.f32 %v2648_v57, %v1417_v44 }
 0x653   : > { %v1441_v46 = vmul.f32 %v2714_v45, %v2714_v45 }
 0x655   : > { %v1465_v47 = vsel %vm880_vm3, %v1441_v46, 0.0  ;;  %v1487_v46 = vmul.f32 %v1461_v39, %v2630_v48 }
 0x656   : > { %v1391_v49 = vpop.xlane.xlu0 %1390  ;;  %1466 = vadd.xlane.f32.xlu0 %v1465_v47 }
 0x657   : > { %v1418_v51 = vmul.f32 %v2630_v48, %v1391_v49 }
 0x659   : > { %v2721_v52 = vsub.f32 %v2653_v62, %v1418_v51 }
 0x65b   : > { %v1442_v53 = vmul.f32 %v2721_v52, %v2721_v52 }
 0x65d   : > { %v1468_v54 = vsel %vm880_vm3, %v1442_v53, 0.0 }
 0x65e   : > { %v1394_v55 = vpop.xlane.xlu1 %1393  ;;  %v1397_v56 = vpop.xlane.xlu0 %1396  ;;  %1469 = vadd.xlane.f32.xlu0 %v1468_v54  ;;  %v2755_v54 = vld [vmem:[%s1639_s16] ss:$0 sm:$0xff] }
 0x65f   : > { %v1419_v58 = vmul.f32 %v2630_v48, %v1394_v55  ;;  %v1420_v60 = vmul.f32 %v2630_v48, %v1397_v56 }
 0x661   : > { %v2728_v59 = vsub.f32 %v2662_v6, %v1419_v58  ;;  %v2738_v0 = vsub.f32 %v2659_v2, %v1420_v60  ;;  %v2757_v58 = vadd.f32 1e-05, %v1487_v46 }
 0x663   : > { %v1443_v61 = vmul.f32 %v2728_v59, %v2728_v59  ;;  %v1444_v26 = vmul.f32 %v2738_v0, %v2738_v0  ;;  %vm1553_vm4 = vweird.f32 %v2757_v58 }
 0x665   : > { %v1471_v1 = vsel %vm880_vm3, %v1443_v61, 0.0  ;;  %v1474_v25 = vsel %vm880_vm3, %v1444_v26, 0.0 }
 0x666   : > { %v1449_v14 = vpop.xlane.xlu0 %1448  ;;  %1472 = vadd.xlane.f32.xlu0 %v1471_v1 }
 0x667   : > { %v1483_v3 = vmul.f32 %v1449_v14, %v2630_v48 }
 0x669   : > { %v1495_v21 = vadd.f32 1e-05, %v1483_v3  ;;  %v2768_v3 = vld [vmem:[%s1656_s21] ss:$0 sm:$0xff]  ;;  %s2188_s21 = sshll.u32 %s2341_s25, 5 }
 0x66a   : > { %s1875_s19 = scalar_lea.vmem %s2949_s11, %s2188_s21 }
 0x66b   : > { %2271 = vrsqrt.f32 %v1495_v21  ;;  %vm1513_vm7 = vweird.f32 %v1495_v21 }
 0x66e   : > { %v1452_v9 = vpop.xlane.xlu0 %1451  ;;  %1475 = vadd.xlane.f32.xlu0 %v1474_v25 }
 0x66f   : > { %v1484_v11 = vmul.f32 %v1452_v9, %v2630_v48 }
 0x671   : > { %v2272_v19 = vpop.eup %2271  ;;  %v1496_v20 = vadd.f32 1e-05, %v1484_v11 }
 0x672   : > { %v1508_v22 = vmul.f32 %v2272_v19, %v1495_v21  ;;  %vm1514_vm6 = vweird.f32 %v2272_v19 }
 0x673   : > { %2273 = vrsqrt.f32 %v1496_v20  ;;  %vm1515_vm8 = vmor %vm1513_vm7, %vm1514_vm6  ;;  %vm1523_vm10 = vweird.f32 %v1496_v20 }
 0x674   : > { %v1509_v24 = vmul.f32 %v2272_v19, %v1508_v22 }
 0x676   : > { %v1510_v29 = vmul.f32 0.5, %v1509_v24  ;;  %v1455_v30 = vpop.xlane.xlu0 %1454 }
 0x677   : > { %v1485_v32 = vmul.f32 %v1455_v30, %v2630_v48 }
 0x678   : > { %v1511_v13 = vsub.f32 1.5, %v1510_v29 }
 0x679   : > { %v2274_v34 = vpop.eup %2273  ;;  %v1497_v35 = vadd.f32 1e-05, %v1485_v32 }
 0x67a   : > { %v1512_v36 = vmul.f32 %v2272_v19, %v1511_v13  ;;  %v1518_v37 = vmul.f32 %v2274_v34, %v1496_v20  ;;  %vm1524_vm9 = vweird.f32 %v2274_v34 }
 0x67b   : > { %2275 = vrsqrt.f32 %v1497_v35  ;;  %vm1525_vm11 = vmor %vm1523_vm10, %vm1524_vm9  ;;  %vm1533_vm13 = vweird.f32 %v1497_v35 }
 0x67c   : > { %v1519_v38 = vmul.f32 %v2274_v34, %v1518_v37  ;;  %v1516_v40 = vsel %vm1515_vm8, %v2272_v19, %v1512_v36 }
 0x67d   : > { %v1627_v47 = vmul.f32 %v1516_v40, %v2667_v7 }
 0x67e   : > { %v1520_v41 = vmul.f32 0.5, %v1519_v38  ;;  %v1458_v42 = vpop.xlane.xlu0 %1457 }
 0x67f   : > { %v1486_v43 = vmul.f32 %v1458_v42, %v2630_v48  ;;  %v1644_v60 = vmul.f32 %v2755_v54, %v1627_v47 }
 0x680   : > { %v1521_v28 = vsub.f32 1.5, %v1520_v41 }
 0x681   : > { %v2276_v44 = vpop.eup %2275  ;;  %v1498_v49 = vadd.f32 1e-05, %v1486_v43  ;;  %v1661_v26 = vadd.f32 %v2768_v3, %v1644_v60 }
 0x682   : > { %v1522_v51 = vmul.f32 %v2274_v34, %v1521_v28  ;;  %v1528_v53 = vmul.f32 %v2276_v44, %v1497_v35  ;;  %vm1534_vm12 = vweird.f32 %v2276_v44 }
 0x683   : > { %2277 = vrsqrt.f32 %v1498_v49  ;;  %vm1535_vm14 = vmor %vm1533_vm13, %vm1534_vm12  ;;  %vm1543_vm0 = vweird.f32 %v1498_v49 }
 0x684   : > { %v1526_v55 = vsel %vm1525_vm11, %v2274_v34, %v1522_v51  ;;  %v1529_v56 = vmul.f32 %v2276_v44, %v1528_v53  ;;  %2279 = vrsqrt.f32 %v2757_v58 }
 0x685   : > { %v1628_v7 = vmul.f32 %v1526_v55, %v2675_v10 }
 0x686   : > { %v1530_v61 = vmul.f32 0.5, %v1529_v56  ;;  %v1400_v63 = vpop.xlane.xlu0 %1399 }
 0x687   : > { %v1421_v1 = vmul.f32 %v2630_v48, %v1400_v63  ;;  %v1645_v14 = vmul.f32 %v2755_v54, %v1628_v7 }
 0x688   : > { %v1531_v5 = vsub.f32 1.5, %v1530_v61 }
 0x689   : > { %v2278_v10 = vpop.eup %2277  ;;  %v2776_v21 = vsub.f32 %v2696_v16, %v1421_v1  ;;  %v1662_v25 = vadd.f32 %v2768_v3, %v1645_v14 }
 0x68a   : > { %v1532_v9 = vmul.f32 %v2276_v44, %v1531_v5  ;;  %v1538_v11 = vmul.f32 %v2278_v10, %v1498_v49  ;;  %v2280_v13 = vpop.eup %2279  ;;  %vm1544_vm15 = vweird.f32 %v2278_v10 }
 0x68b   : > { %v1673_v19 = vpack.c.bf16 %v1662_v25, %v1661_v26  ;;  %v1445_v20 = vmul.f32 %v2776_v21, %v2776_v21  ;;  %v1548_v35 = vmul.f32 %v2280_v13, %v2757_v58  ;;  %vm1545_vm1 = vmor %vm1543_vm0, %vm1544_vm15  ;;  %vm1554_vm2 = vweird.f32 %v2280_v13 }
 0x68c   : > { %v1539_v22 = vmul.f32 %v2278_v10, %v1538_v11  ;;  %v1536_v29 = vsel %vm1535_vm14, %v2276_v44, %v1532_v9  ;;  %vm1555_vm5 = vmor %vm1553_vm4, %vm1554_vm2 }
 0x68d   : > { %2145 = vmatmul.msk.bf16.vlgmr.msrb.gmra.mxu1 %vm880_vm3, %v1673_v19  ;;  %v1477_v24 = vsel %vm880_vm3, %v1445_v20, 0.0  ;;  %v1629_v37 = vmul.f32 %v1536_v29, %v2682_v23  ;;  %v1549_v44 = vmul.f32 %v2280_v13, %v1548_v35 }
 0x68e   : > { %v1540_v30 = vmul.f32 0.5, %v1539_v22  ;;  %1478 = vadd.xlane.f32.xlu0 %v1477_v24  ;;  %v1403_v32 = vpop.xlane.xlu0 %1402 }
 0x68f   : > { %v1422_v34 = vmul.f32 %v2630_v48, %v1403_v32  ;;  %v1646_v28 = vmul.f32 %v2755_v54, %v1629_v37  ;;  %v1550_v55 = vmul.f32 0.5, %v1549_v44 }
 0x690   : > { %v1541_v36 = vsub.f32 1.5, %v1540_v30 }
 0x691   : > { %v2787_v38 = vsub.f32 %v2701_v18, %v1422_v34  ;;  %v1663_v49 = vadd.f32 %v2768_v3, %v1646_v28 }
 0x692   : > { %v1542_v39 = vmul.f32 %v2278_v10, %v1541_v36 }
 0x693   : > { %v1446_v40 = vmul.f32 %v2787_v38, %v2787_v38 }
 0x694   : > { %v1546_v41 = vsel %vm1545_vm1, %v2278_v10, %v1542_v39 }
 0x695   : > { %v1630_v42 = vmul.f32 %v1546_v41, %v2689_v31  ;;  %v1480_v43 = vsel %vm880_vm3, %v1446_v40, 0.0  ;;  %v1551_v31 = vsub.f32 1.5, %v1550_v55 }
 0x696   : > { %1481 = vadd.xlane.f32.xlu0 %v1480_v43  ;;  %v1464_v23 = vpop.xlane.xlu0 %1463 }
 0x697   : > { %v1488_v46 = vmul.f32 %v1464_v23, %v2630_v48  ;;  %v1647_v47 = vmul.f32 %v2755_v54, %v1630_v42  ;;  %v1552_v60 = vmul.f32 %v2280_v13, %v1551_v31 }
 0x699   : > { %v1500_v51 = vadd.f32 1e-05, %v1488_v46  ;;  %v1664_v53 = vadd.f32 %v2768_v3, %v1647_v47  ;;  %v1556_v1 = vsel %vm1555_vm5, %v2280_v13, %v1552_v60 }
 0x69a   : > { %v1631_v10 = vmul.f32 %v1556_v1, %v2634_v50 }
 0x69b   : > { %2281 = vrsqrt.f32 %v1500_v51  ;;  %v1674_v56 = vpack.c.bf16 %v1664_v53, %v1663_v49  ;;  %vm1563_vm7 = vweird.f32 %v1500_v51 }
 0x69c   : > { %v1648_v11 = vmul.f32 %v2755_v54, %v1631_v10 }
 0x69d   : > { %2146 = vmatmul.msk.bf16.gmra.mxu1 %vm880_vm3, %v1674_v56 }
 0x69e   : > { %v1665_v58 = vadd.f32 %v2768_v3, %v1648_v11 }
 0x6a1   : > { %v2282_v7 = vpop.eup %2281 }
 0x6a2   : > { %v1558_v61 = vmul.f32 %v2282_v7, %v1500_v51  ;;  %vm1564_vm6 = vweird.f32 %v2282_v7 }
 0x6a3   : > { %vm1565_vm8 = vmor %vm1563_vm7, %vm1564_vm6 }
 0x6a4   : > { %v1559_v63 = vmul.f32 %v2282_v7, %v1558_v61 }
 0x6a6   : > { %v1560_v14 = vmul.f32 0.5, %v1559_v63 }
 0x6a8   : > { %v1561_v5 = vsub.f32 1.5, %v1560_v14 }
 0x6aa   : > { %v1562_v26 = vmul.f32 %v2282_v7, %v1561_v5 }
 0x6ac   : > { %v1566_v25 = vsel %vm1565_vm8, %v2282_v7, %v1562_v26 }
 0x6ad   : > { %v1632_v9 = vmul.f32 %v1566_v25, %v2707_v27 }
 0x6af   : > { %v1649_v19 = vmul.f32 %v2755_v54, %v1632_v9 }
 0x6b1   : > { %v1666_v20 = vadd.f32 %v2768_v3, %v1649_v19 }
 0x6b3   : > { %v1675_v22 = vpack.c.bf16 %v1666_v20, %v1665_v58 }
 0x6b5   : > { %2147 = vmatmul.msk.bf16.gmra.mxu1 %vm880_vm3, %v1675_v22 }
 0x6c9   : > { %v1467_v24 = vpop.xlane.xlu0 %1466 }
 0x6ca   : > { %v1489_v50 = vmul.f32 %v1467_v24, %v2630_v48 }
 0x6cc   : > { %v1501_v29 = vadd.f32 1e-05, %v1489_v50 }
 0x6ce   : > { %2283 = vrsqrt.f32 %v1501_v29  ;;  %vm1573_vm10 = vweird.f32 %v1501_v29 }
 0x6d1   : > { %v1470_v30 = vpop.xlane.xlu0 %1469 }
 0x6d2   : > { %v1490_v32 = vmul.f32 %v1470_v30, %v2630_v48 }
 0x6d4   : > { %v2284_v27 = vpop.eup %2283  ;;  %v1502_v13 = vadd.f32 1e-05, %v1490_v32 }
 0x6d5   : > { %v1568_v34 = vmul.f32 %v2284_v27, %v1501_v29  ;;  %vm1574_vm9 = vweird.f32 %v2284_v27 }
 0x6d6   : > { %2285 = vrsqrt.f32 %v1502_v13  ;;  %vm1575_vm11 = vmor %vm1573_vm10, %vm1574_vm9  ;;  %vm1583_vm13 = vweird.f32 %v1502_v13 }
 0x6d7   : > { %v1569_v36 = vmul.f32 %v2284_v27, %v1568_v34  ;;  %v2192_v34 = vld [vmem:[%s1875_s19 + $0x18] sm:$0xff] }
 0x6d8   : > { %1936 = vmatpush.bf16.msrb.mxu2 %v2192_v34 }
 0x6d9   : > { %v1570_v37 = vmul.f32 0.5, %v1569_v36  ;;  %v1473_v35 = vpop.xlane.xlu0 %1472 }
 0x6da   : > { %v1491_v39 = vmul.f32 %v1473_v35, %v2630_v48 }
 0x6db   : > { %v1571_v40 = vsub.f32 1.5, %v1570_v37  ;;  %v2191_v37 = vld [vmem:[%s1875_s19 + $0x10] sm:$0xff] }
 0x6dc   : > { %v2286_v41 = vpop.eup %2285  ;;  %v1503_v42 = vadd.f32 1e-05, %v1491_v39  ;;  %1937 = vmatpush.bf16.msrb.mxu2 %v2191_v37 }
 0x6dd   : > { %v1572_v43 = vmul.f32 %v2284_v27, %v1571_v40  ;;  %v1578_v28 = vmul.f32 %v2286_v41, %v1502_v13  ;;  %vm1584_vm12 = vweird.f32 %v2286_v41  ;;  %v2190_v40 = vld [vmem:[%s1875_s19 + $0x8] sm:$0xff] }
 0x6de   : > { %2287 = vrsqrt.f32 %v1503_v42  ;;  %vm1585_vm14 = vmor %vm1583_vm13, %vm1584_vm12  ;;  %vm1593_vm0 = vweird.f32 %v1503_v42  ;;  %vm1913_vm12 = vcmask 523264  }
 0x6df   : > { %v1579_v44 = vmul.f32 %v2286_v41, %v1578_v28  ;;  %v1576_v23 = vsel %vm1575_vm11, %v2284_v27, %v1572_v43 }
 0x6e0   : > { %v1633_v55 = vmul.f32 %v1576_v23, %v2714_v45  ;;  %1938 = vmatpush.bf16.msrb.mxu2 %v2190_v40 }
 0x6e1   : > { %v1580_v46 = vmul.f32 0.5, %v1579_v44  ;;  %v1476_v47 = vpop.xlane.xlu0 %1475 }
 0x6e2   : > { %v1492_v51 = vmul.f32 %v1476_v47, %v2630_v48  ;;  %v1650_v1 = vmul.f32 %v2755_v54, %v1633_v55 }
 0x6e3   : > { %v1581_v49 = vsub.f32 1.5, %v1580_v46 }
 0x6e4   : > { %v2288_v53 = vpop.eup %2287  ;;  %v1504_v56 = vadd.f32 1e-05, %v1492_v51  ;;  %v1667_v25 = vadd.f32 %v2768_v3, %v1650_v1 }
 0x6e5   : > { %v1582_v31 = vmul.f32 %v2286_v41, %v1581_v49  ;;  %v1588_v7 = vmul.f32 %v2288_v53, %v1503_v42  ;;  %vm1594_vm15 = vweird.f32 %v2288_v53  ;;  %v2189_v42 = vld [vmem:[%s1875_s19] sm:$0xff] }
 0x6e6   : > { %2289 = vrsqrt.f32 %v1504_v56  ;;  %vm1595_vm1 = vmor %vm1593_vm0, %vm1594_vm15  ;;  %vm1603_vm4 = vweird.f32 %v1504_v56  ;;  %1939 = vmatpush.bf16.msrb.mxu2 %v2189_v42 }
 0x6e7   : > { %v1586_v60 = vsel %vm1585_vm14, %v2286_v41, %v1582_v31  ;;  %v1589_v61 = vmul.f32 %v2288_v53, %v1588_v7  ;;  %v2836_v41 = vld [vmem:[%s1685_s23] ss:$0 sm:$0xff] }
 0x6e8   : > { %v1634_v63 = vmul.f32 %v1586_v60, %v2721_v52 }
 0x6e9   : > { %v1590_v14 = vmul.f32 0.5, %v1589_v61 }
 0x6ea   : > { %v1651_v5 = vmul.f32 %v2755_v54, %v1634_v63 }
 0x6eb   : > { %v1591_v10 = vsub.f32 1.5, %v1590_v14 }
 0x6ec   : > { %v2290_v26 = vpop.eup %2289  ;;  %v1668_v45 = vadd.f32 %v2768_v3, %v1651_v5 }
 0x6ed   : > { %v1592_v9 = vmul.f32 %v2288_v53, %v1591_v10  ;;  %v1598_v11 = vmul.f32 %v2290_v26, %v1504_v56  ;;  %vm1604_vm2 = vweird.f32 %v2290_v26 }
 0x6ee   : > { %v1676_v19 = vpack.c.bf16 %v1668_v45, %v1667_v25  ;;  %vm1605_vm5 = vmor %vm1603_vm4, %vm1604_vm2 }
 0x6ef   : > { %v1599_v58 = vmul.f32 %v2290_v26, %v1598_v11  ;;  %v1596_v52 = vsel %vm1595_vm1, %v2288_v53, %v1592_v9 }
 0x6f0   : > { %2148 = vmatmul.msk.bf16.gmra.mxu1 %vm880_vm3, %v1676_v19  ;;  %v1635_v24 = vmul.f32 %v1596_v52, %v2728_v59 }
 0x6f1   : > { %v1600_v20 = vmul.f32 0.5, %v1599_v58 }
 0x6f2   : > { %v1652_v32 = vmul.f32 %v2755_v54, %v1635_v24 }
 0x6f3   : > { %v1601_v22 = vsub.f32 1.5, %v1600_v20 }
 0x6f4   : > { %v1669_v13 = vadd.f32 %v2768_v3, %v1652_v32 }
 0x6f5   : > { %v1602_v50 = vmul.f32 %v2290_v26, %v1601_v22 }
 0x6f7   : > { %v1606_v29 = vsel %vm1605_vm5, %v2290_v26, %v1602_v50 }
 0x6f8   : > { %v1636_v30 = vmul.f32 %v1606_v29, %v2738_v0 }
 0x6fa   : > { %v1653_v27 = vmul.f32 %v2755_v54, %v1636_v30 }
 0x6fc   : > { %v1670_v59 = vadd.f32 %v2768_v3, %v1653_v27 }
 0x6fe   : > { %v1677_v36 = vpack.c.bf16 %v1670_v59, %v1669_v13 }
 0x700   : > { %2149 = vmatmul.msk.bf16.gmra.mxu1 %vm880_vm3, %v1677_v36 }
 0x701   : > { %v1479_v0 = vpop.xlane.xlu0 %1478 }
 0x702   : > { %v1493_v35 = vmul.f32 %v1479_v0, %v2630_v48 }
 0x704   : > { %v1505_v39 = vadd.f32 1e-05, %v1493_v35 }
 0x706   : > { %2291 = vrsqrt.f32 %v1505_v39  ;;  %vm1613_vm7 = vweird.f32 %v1505_v39 }
 0x709   : > { %v1482_v43 = vpop.xlane.xlu0 %1481 }
 0x70a   : > { %v1494_v28 = vmul.f32 %v1482_v43, %v2630_v48  ;;  %v1729_v44 = vpop.f32.mrf.mxu1 }
 0x70b   : > { %v1730_v23 = vadd.f32 %v2836_v41, %v1729_v44 }
 0x70c   : > { %v2292_v46 = vpop.eup %2291  ;;  %v1506_v47 = vadd.f32 1e-05, %v1494_v28 }
 0x70d   : > { %v1608_v51 = vmul.f32 %v2292_v46, %v1505_v39  ;;  %v1771_v49 = vmul.f32 0.044715, %v1730_v23  ;;  %vm1614_vm6 = vweird.f32 %v2292_v46 }
 0x70e   : > { %2293 = vrsqrt.f32 %v1506_v47  ;;  %vm1615_vm8 = vmor %vm1613_vm7, %vm1614_vm6  ;;  %vm1623_vm10 = vweird.f32 %v1506_v47 }
 0x70f   : > { %v1609_v53 = vmul.f32 %v2292_v46, %v1608_v51  ;;  %v1783_v55 = vmul.f32 %v1771_v49, %v1730_v23 }
 0x711   : > { %v1610_v56 = vmul.f32 0.5, %v1609_v53  ;;  %v1795_v31 = vmul.f32 %v1783_v55, %v1730_v23 }
 0x712   : > { %v1731_v7 = vpop.f32.mrf.mxu1 }
 0x713   : > { %v1611_v60 = vsub.f32 1.5, %v1610_v56  ;;  %v1732_v61 = vadd.f32 %v2836_v41, %v1731_v7  ;;  %v1807_v1 = vadd.f32 %v1795_v31, %v1730_v23 }
 0x714   : > { %v2294_v63 = vpop.eup %2293 }
 0x715   : > { %v1612_v48 = vmul.f32 %v2292_v46, %v1611_v60  ;;  %v1618_v14 = vmul.f32 %v2294_v63, %v1506_v47  ;;  %v1772_v5 = vmul.f32 0.044715, %v1732_v61  ;;  %v1819_v26 = vmul.f32 0.7978846, %v1807_v1 }
 0x716   : > { %vm1624_vm9 = vweird.f32 %v2294_v63 }
 0x717   : > { %v1619_v10 = vmul.f32 %v2294_v63, %v1618_v14  ;;  %v1784_v25 = vmul.f32 %v1772_v5, %v1732_v61  ;;  %v1616_v45 = vsel %vm1615_vm8, %v2292_v46, %v1612_v48  ;;  %2295 = vtanh.f32 %v1819_v26  ;;  %vm1625_vm11 = vmor %vm1623_vm10, %vm1624_vm9 }
 0x718   : > { %v1637_v20 = vmul.f32 %v1616_v45, %v2776_v21  ;;  %v1760_v46 = vmul.f32 0.5, %v1732_v61 }
 0x719   : > { %v1620_v9 = vmul.f32 0.5, %v1619_v10  ;;  %v1796_v11 = vmul.f32 %v1784_v25, %v1732_v61 }
 0x71a   : > { %v1734_v19 = vpop.f32.mrf.mxu1  ;;  %v1654_v13 = vmul.f32 %v2755_v54, %v1637_v20 }
 0x71b   : > { %v1621_v58 = vsub.f32 1.5, %v1620_v9  ;;  %v1735_v52 = vadd.f32 %v2836_v41, %v1734_v19  ;;  %v1808_v22 = vadd.f32 %v1796_v11, %v1732_v61 }
 0x71c   : > { %v1671_v35 = vadd.f32 %v2768_v3, %v1654_v13 }
 0x71d   : > { %v1622_v24 = vmul.f32 %v2294_v63, %v1621_v58  ;;  %v1773_v50 = vmul.f32 0.044715, %v1735_v52  ;;  %v1820_v29 = vmul.f32 0.7978846, %v1808_v22  ;;  %v2296_v34 = vpop.eup %2295  ;;  %v1761_v1 = vmul.f32 0.5, %v1735_v52 }
 0x71e   : > { %v1843_v42 = vadd.f32 1.0, %v2296_v34 }
 0x71f   : > { %v1626_v30 = vsel %vm1625_vm11, %v2294_v63, %v1622_v24  ;;  %v1785_v32 = vmul.f32 %v1773_v50, %v1735_v52  ;;  %2297 = vtanh.f32 %v1820_v29 }
 0x720   : > { %v1638_v27 = vmul.f32 %v1626_v30, %v2787_v38  ;;  %v1759_v38 = vmul.f32 0.5, %v1730_v23 }
 0x721   : > { %v1797_v59 = vmul.f32 %v1785_v32, %v1735_v52 }
 0x722   : > { %v1736_v36 = vpop.f32.mrf.mxu1  ;;  %v1655_v37 = vmul.f32 %v2755_v54, %v1638_v27  ;;  %v1855_v54 = vmul.f32 %v1843_v42, %v1759_v38 }
 0x723   : > { %v1737_v21 = vadd.f32 %v2836_v41, %v1736_v36  ;;  %v1809_v0 = vadd.f32 %v1797_v59, %v1735_v52 }
 0x724   : > { %v1672_v39 = vadd.f32 %v2768_v3, %v1655_v37 }
 0x725   : > { %v1774_v40 = vmul.f32 0.044715, %v1737_v21  ;;  %v2298_v43 = vpop.eup %2297  ;;  %v1821_v51 = vmul.f32 0.7978846, %v1809_v0  ;;  %v1762_v48 = vmul.f32 0.5, %v1737_v21 }
 0x726   : > { %v1678_v28 = vpack.c.bf16 %v1672_v39, %v1671_v35  ;;  %v1844_v47 = vadd.f32 1.0, %v2298_v43 }
 0x727   : > { %v1786_v44 = vmul.f32 %v1774_v40, %v1737_v21  ;;  %2299 = vtanh.f32 %v1821_v51 }
 0x728   : > { %2150 = vmatmul.msk.bf16.gmra.mxu1 %vm880_vm3, %v1678_v28  ;;  %v1856_v49 = vmul.f32 %v1844_v47, %v1760_v46 }
 0x729   : > { %v1798_v53 = vmul.f32 %v1786_v44, %v1737_v21 }
 0x72a   : > { %v1867_v55 = vpack.c.bf16 %v1856_v49, %v1855_v54 }
 0x72b   : > { %v1810_v56 = vadd.f32 %v1798_v53, %v1737_v21 }
 0x72c   : > { %2169 = vmatmul.msk.bf16.vlgmr.msrb.gmra.mxu2 %vm1913_vm12, %v1867_v55 }
 0x72d   : > { %v1822_v3 = vmul.f32 0.7978846, %v1810_v56  ;;  %v2300_v23 = vpop.eup %2299 }
 0x72e   : > { %v1845_v60 = vadd.f32 1.0, %v2300_v23 }
 0x72f   : > { %2301 = vtanh.f32 %v1822_v3 }
 0x730   : > { %v1857_v10 = vmul.f32 %v1845_v60, %v1761_v1 }
 0x732   : > { %v1739_v31 = vpop.f32.mrf.mxu1 }
 0x733   : > { %v1740_v7 = vadd.f32 %v2836_v41, %v1739_v31 }
 0x735   : > { %v2302_v61 = vpop.eup %2301  ;;  %v1775_v63 = vmul.f32 0.044715, %v1740_v7  ;;  %v1763_v27 = vmul.f32 0.5, %v1740_v7 }
 0x736   : > { %v1846_v14 = vadd.f32 1.0, %v2302_v61 }
 0x737   : > { %v1787_v5 = vmul.f32 %v1775_v63, %v1740_v7 }
 0x738   : > { %v1858_v26 = vmul.f32 %v1846_v14, %v1762_v48 }
 0x739   : > { %v1799_v25 = vmul.f32 %v1787_v5, %v1740_v7 }
 0x73a   : > { %v1741_v45 = vpop.f32.mrf.mxu1  ;;  %v1868_v9 = vpack.c.bf16 %v1858_v26, %v1857_v10 }
 0x73b   : > { %v1742_v11 = vadd.f32 %v2836_v41, %v1741_v45  ;;  %v1811_v19 = vadd.f32 %v1799_v25, %v1740_v7 }
 0x73c   : > { %2170 = vmatmul.msk.bf16.gmra.mxu2 %vm1913_vm12, %v1868_v9 }
 0x73d   : > { %v1776_v58 = vmul.f32 0.044715, %v1742_v11  ;;  %v1823_v22 = vmul.f32 0.7978846, %v1811_v19  ;;  %v1764_v13 = vmul.f32 0.5, %v1742_v11 }
 0x73f   : > { %v1788_v20 = vmul.f32 %v1776_v58, %v1742_v11  ;;  %2303 = vtanh.f32 %v1823_v22 }
 0x741   : > { %v1800_v24 = vmul.f32 %v1788_v20, %v1742_v11 }
 0x743   : > { %v1812_v50 = vadd.f32 %v1800_v24, %v1742_v11 }
 0x745   : > { %v1824_v52 = vmul.f32 0.7978846, %v1812_v50  ;;  %v2304_v29 = vpop.eup %2303 }
 0x746   : > { %v1847_v30 = vadd.f32 1.0, %v2304_v29 }
 0x747   : > { %2305 = vtanh.f32 %v1824_v52 }
 0x748   : > { %v1859_v34 = vmul.f32 %v1847_v30, %v1763_v27 }
 0x74d   : > { %v2306_v32 = vpop.eup %2305 }
 0x74e   : > { %v1848_v59 = vadd.f32 1.0, %v2306_v32 }
 0x750   : > { %v1860_v36 = vmul.f32 %v1848_v59, %v1764_v13 }
 0x752   : > { %v1869_v37 = vpack.c.bf16 %v1860_v36, %v1859_v34 }
 0x754   : > { %2171 = vmatmul.msk.bf16.gmra.mxu2 %vm1913_vm12, %v1869_v37 }
 0x76d   : > { %v1744_v21 = vpop.f32.mrf.mxu1 }
 0x76e   : > { %v1745_v0 = vadd.f32 %v2836_v41, %v1744_v21 }
 0x770   : > { %v1777_v35 = vmul.f32 0.044715, %v1745_v0  ;;  %v1765_v48 = vmul.f32 0.5, %v1745_v0 }
 0x772   : > { %v1789_v39 = vmul.f32 %v1777_v35, %v1745_v0 }
 0x774   : > { %v1801_v40 = vmul.f32 %v1789_v39, %v1745_v0 }
 0x775   : > { %v1746_v42 = vpop.f32.mrf.mxu1 }
 0x776   : > { %v1747_v43 = vadd.f32 %v2836_v41, %v1746_v42  ;;  %v1813_v28 = vadd.f32 %v1801_v40, %v1745_v0  ;;  %v2871_v0 = vld [vmem:[%s1884_s20] ss:$0 sm:$0xff] }
 0x778   : > { %v1778_v38 = vmul.f32 0.044715, %v1747_v43  ;;  %v1825_v46 = vmul.f32 0.7978846, %v1813_v28  ;;  %v1766_v14 = vmul.f32 0.5, %v1747_v43 }
 0x77a   : > { %v1790_v44 = vmul.f32 %v1778_v38, %v1747_v43  ;;  %2307 = vtanh.f32 %v1825_v46 }
 0x77c   : > { %v1802_v47 = vmul.f32 %v1790_v44, %v1747_v43 }
 0x77d   : > { %v1749_v51 = vpop.f32.mrf.mxu1 }
 0x77e   : > { %v1750_v54 = vadd.f32 %v2836_v41, %v1749_v51  ;;  %v1814_v49 = vadd.f32 %v1802_v47, %v1747_v43 }
 0x780   : > { %v1779_v53 = vmul.f32 0.044715, %v1750_v54  ;;  %v1826_v55 = vmul.f32 0.7978846, %v1814_v49  ;;  %v2308_v3 = vpop.eup %2307  ;;  %v1767_v50 = vmul.f32 0.5, %v1750_v54 }
 0x781   : > { %v1849_v61 = vadd.f32 1.0, %v2308_v3 }
 0x782   : > { %v1791_v56 = vmul.f32 %v1779_v53, %v1750_v54  ;;  %2309 = vtanh.f32 %v1826_v55 }
 0x783   : > { %v1861_v25 = vmul.f32 %v1849_v61, %v1765_v48 }
 0x784   : > { %v1803_v23 = vmul.f32 %v1791_v56, %v1750_v54 }
 0x785   : > { %v1751_v31 = vpop.f32.mrf.mxu1 }
 0x786   : > { %v1752_v7 = vadd.f32 %v2836_v41, %v1751_v31  ;;  %v1815_v60 = vadd.f32 %v1803_v23, %v1750_v54 }
 0x788   : > { %v2310_v63 = vpop.eup %2309  ;;  %v1780_v1 = vmul.f32 0.044715, %v1752_v7  ;;  %v1827_v26 = vmul.f32 0.7978846, %v1815_v60  ;;  %v1768_v52 = vmul.f32 0.5, %v1752_v7 }
 0x789   : > { %v1850_v5 = vadd.f32 1.0, %v2310_v63 }
 0x78a   : > { %v1792_v10 = vmul.f32 %v1780_v1, %v1752_v7  ;;  %2311 = vtanh.f32 %v1827_v26 }
 0x78b   : > { %v1862_v45 = vmul.f32 %v1850_v5, %v1766_v14 }
 0x78c   : > { %v1804_v9 = vmul.f32 %v1792_v10, %v1752_v7 }
 0x78d   : > { %v1870_v11 = vpack.c.bf16 %v1862_v45, %v1861_v25 }
 0x78e   : > { %v1816_v19 = vadd.f32 %v1804_v9, %v1752_v7 }
 0x78f   : > { %2172 = vmatmul.msk.bf16.gmra.mxu2 %vm1913_vm12, %v1870_v11 }
 0x790   : > { %v1828_v58 = vmul.f32 0.7978846, %v1816_v19  ;;  %v2312_v20 = vpop.eup %2311 }
 0x791   : > { %v1851_v22 = vadd.f32 1.0, %v2312_v20 }
 0x792   : > { %2313 = vtanh.f32 %v1828_v58 }
 0x793   : > { %v1863_v30 = vmul.f32 %v1851_v22, %v1767_v50 }
 0x798   : > { %v2314_v24 = vpop.eup %2313 }
 0x799   : > { %v1852_v29 = vadd.f32 1.0, %v2314_v24 }
 0x79b   : > { %v1864_v32 = vmul.f32 %v1852_v29, %v1768_v52 }
 0x79d   : > { %v1871_v27 = vpack.c.bf16 %v1864_v32, %v1863_v30 }
 0x79f   : > { %2173 = vmatmul.msk.bf16.gmra.mxu2 %vm1913_vm12, %v1871_v27 }
 0x7a5   : > { %v1754_v13 = vpop.f32.mrf.mxu1 }
 0x7a6   : > { %v1755_v59 = vadd.f32 %v2836_v41, %v1754_v13 }
 0x7a8   : > { %v1781_v34 = vmul.f32 0.044715, %v1755_v59  ;;  %v1769_v23 = vmul.f32 0.5, %v1755_v59 }
 0x7aa   : > { %v1793_v36 = vmul.f32 %v1781_v34, %v1755_v59 }
 0x7ac   : > { %v1805_v37 = vmul.f32 %v1793_v36, %v1755_v59 }
 0x7ad   : > { %v1756_v21 = vpop.f32.mrf.mxu1 }
 0x7ae   : > { %v1757_v35 = vadd.f32 %v2836_v41, %v1756_v21  ;;  %v1817_v39 = vadd.f32 %v1805_v37, %v1755_v59 }
 0x7af   : > { %v1941_v42 = vpop.f32.mrf.mxu2 }
 0x7b0   : > { %v1782_v40 = vmul.f32 0.044715, %v1757_v35  ;;  %v1942_v43 = vadd.f32 %v2871_v0, %v1941_v42  ;;  %v1829_v38 = vmul.f32 0.7978846, %v1817_v39  ;;  %v1770_v31 = vmul.f32 0.5, %v1757_v35 }
 0x7b2   : > { %v1794_v28 = vmul.f32 %v1782_v40, %v1757_v35  ;;  %v1971_v44 = vadd.f32 %v1942_v43, %v2601_v4  ;;  %2315 = vtanh.f32 %v1829_v38 }
 0x7b4   : > { %v1806_v46 = vmul.f32 %v1794_v28, %v1757_v35  ;;  %1983 = vst.msk [vmem:[%s2468_s22] sm:$0xff] %vm880_vm3, %v1971_v44 }
 0x7b6   : > { %v1818_v47 = vadd.f32 %v1806_v46, %v1757_v35 }
 0x7b7   : > { %v1943_v51 = vpop.f32.mrf.mxu2 }
 0x7b8   : > { %v1830_v54 = vmul.f32 0.7978846, %v1818_v47  ;;  %v1944_v41 = vadd.f32 %v2871_v0, %v1943_v51  ;;  %v2316_v53 = vpop.eup %2315 }
 0x7b9   : > { %v1853_v55 = vadd.f32 1.0, %v2316_v53 }
 0x7ba   : > { %2317 = vtanh.f32 %v1830_v54  ;;  %v1972_v49 = vadd.f32 %v1944_v41, %v2606_v8 }
 0x7bb   : > { %v1865_v61 = vmul.f32 %v1853_v55, %v1769_v23 }
 0x7bc   : > { %1984 = vst.msk [vmem:[%s2468_s22 + $0x8] sm:$0xff] %vm880_vm3, %v1972_v49 }
 0x7bf   : > { %v1946_v4 = vpop.f32.mrf.mxu2 }
 0x7c0   : > { %v2318_v56 = vpop.eup %2317  ;;  %v1947_v3 = vadd.f32 %v2871_v0, %v1946_v4 }
 0x7c1   : > { %v1854_v7 = vadd.f32 1.0, %v2318_v56 }
 0x7c2   : > { %v1973_v60 = vadd.f32 %v1947_v3, %v2611_v12 }
 0x7c3   : > { %v1866_v63 = vmul.f32 %v1854_v7, %v1770_v31 }
 0x7c4   : > { %1985 = vst.msk [vmem:[%s2468_s22 + $0x10] sm:$0xff] %vm880_vm3, %v1973_v60 }
 0x7c5   : > { %v1872_v8 = vpack.c.bf16 %v1866_v63, %v1865_v61 }
 0x7c7   : > { %2174 = vmatmul.msk.bf16.gmra.mxu2 %vm1913_vm12, %v1872_v8  ;;  %v1948_v1 = vpop.f32.mrf.mxu2 }
 0x7c8   : > { %v1949_v48 = vadd.f32 %v2871_v0, %v1948_v1 }
 0x7ca   : > { %v1974_v14 = vadd.f32 %v1949_v48, %v2616_v15 }
 0x7cc   : > { %1986 = vst.msk [vmem:[%s2468_s22 + $0x18] sm:$0xff] %vm880_vm3, %v1974_v14 }
 0x7d7   : > { %v1951_v5 = vpop.f32.mrf.mxu2 }
 0x7d8   : > { %v1952_v12 = vadd.f32 %v2871_v0, %v1951_v5 }
 0x7da   : > { %v1975_v10 = vadd.f32 %v1952_v12, %v2621_v17 }
 0x7dc   : > { %1987 = vst.msk [vmem:[%s2468_s22 + $0x20] sm:$0xff] %vm880_vm3, %v1975_v10 }
 0x7df   : > { %v1953_v26 = vpop.f32.mrf.mxu2 }
 0x7e0   : > { %v1954_v25 = vadd.f32 %v2871_v0, %v1953_v26 }
 0x7e2   : > { %v1976_v45 = vadd.f32 %v1954_v25, %v2626_v33 }
 0x7e4   : > { %1988 = vst.msk [vmem:[%s2468_s22 + $0x28] sm:$0xff] %vm880_vm3, %v1976_v45 }
 0x812   : > { %v1956_v15 = vpop.f32.mrf.mxu2 }
 0x813   : > { %v1957_v9 = vadd.f32 %v2871_v0, %v1956_v15 }
 0x815   : > { %v1977_v11 = vadd.f32 %v1957_v9, %v2648_v57 }
 0x817   : > { %1989 = vst.msk [vmem:[%s2468_s22 + $0x30] sm:$0xff] %vm880_vm3, %v1977_v11 }
 0x81a   : > { %v1958_v17 = vpop.f32.mrf.mxu2 }
 0x81b   : > { %v1959_v19 = vadd.f32 %v2871_v0, %v1958_v17 }
 0x81d   : > { %v1978_v58 = vadd.f32 %v1959_v19, %v2653_v62 }
 0x81f   : > { %1990 = vst.msk [vmem:[%s2468_s22 + $0x38] sm:$0xff] %vm880_vm3, %v1978_v58 }
 0x822   : > { %v1961_v33 = vpop.f32.mrf.mxu2 }
 0x823   : > { %v1962_v20 = vadd.f32 %v2871_v0, %v1961_v33 }
 0x825   : > { %v1979_v22 = vadd.f32 %v1962_v20, %v2662_v6 }
 0x827   : > { %1991 = vst.msk [vmem:[%s2468_s22 + $0x40] sm:$0xff] %vm880_vm3, %v1979_v22 }
 0x82a   : > { %v1963_v24 = vpop.f32.mrf.mxu2 }
 0x82b   : > { %v1964_v57 = vadd.f32 %v2871_v0, %v1963_v24 }
 0x82d   : > { %v1980_v50 = vadd.f32 %v1964_v57, %v2659_v2 }
 0x82f   : > { %1992 = vst.msk [vmem:[%s2468_s22 + $0x48] sm:$0xff] %vm880_vm3, %v1980_v50 }
 0x84a   : > { %v1966_v52 = vpop.f32.mrf.mxu2 }
 0x84b   : > { %v1967_v62 = vadd.f32 %v2871_v0, %v1966_v52 }
 0x84d   : > { %v1981_v29 = vadd.f32 %v1967_v62, %v2696_v16 }
 0x84f   : > { %1993 = vst.msk [vmem:[%s2468_s22 + $0x50] sm:$0xff] %vm880_vm3, %v1981_v29 }
 0x852   : > { %v1968_v30 = vpop.f32.mrf.mxu2 }
 0x853   : > { %v1969_v32 = vadd.f32 %v2871_v0, %v1968_v30 }
 0x855   : > { %v1982_v6 = vadd.f32 %v1969_v32, %v2701_v18 }
 0x857   : > { %1994 = vst.msk [vmem:[%s2468_s22 + $0x58] sm:$0xff] %vm880_vm3, %v1982_v6 }
 0x858 PF: > { %s23_s29 = sadd.s32 1, %s2357_s29   ;;  %s2952_s25 = smov %s2349_s27 }
 0x859   : > { %p20_p7 = scmp.ge.s32.totalorder %s23_s29, 6   ;;  %s2953_s26 = smov %s2353_s28 }
 0x85a   : > { %s2954_s27 = smov %s2957_s30  ;;  %s2955_s28 = smov %s2961_s14 }
 0x85b   :  { %22 = sbr.rel (!%p20_p7) target bundleno = 3 (0x3), region = 116 }

</bundles_post_ra>
